<compile_context>
chip_gen: v7x
topology: tpu7x:2x2x1
jax: 0.10.0
libtpu: 0.0.40
codegen_flags: <defaults>
</compile_context>

<pallas_src>
import functools

import jax
import jax.numpy as jnp
from jax import lax
from jax.experimental import pallas as pl
from jax.experimental.pallas import tpu as pltpu

K_PAD = 896      # 784 padded up to a multiple of 128 lanes
N_OUT_PAD = 128  # 10 padded up to one full lane-width


def _dropout(h, seed_u32, row_off_u32, layer, training):
    """Inverted dropout with p=0.5 via a stateless per-element hash (f32 math)."""
    if not training:
        return h
    rows = lax.broadcasted_iota(jnp.uint32, h.shape, 0) + row_off_u32
    cols = lax.broadcasted_iota(jnp.uint32, h.shape, 1)
    z = (rows * jnp.uint32(2654435761)
         + cols * jnp.uint32(40503)
         + seed_u32 * jnp.uint32(747796405)
         + jnp.uint32(layer) * jnp.uint32(0x9E3779B9))
    # Final avalanche mix (PCG-style) so low/high bits are well scrambled.
    z = z ^ (z >> 16)
    z = z * jnp.uint32(0x7FEB352D)
    z = z ^ (z >> 15)
    z = z * jnp.uint32(0x846CA68B)
    z = z ^ (z >> 16)
    keep = z < jnp.uint32(0x80000000)          # P(keep) = 0.5 on the full word
    return jnp.where(keep, h * 2.0, 0.0)       # scale by 1/(1-p) = 2


def mlp_kernel(training, seed_ref, x_ref, w1_ref, b1_ref, w2_ref, b2_ref,
               w3_ref, b3_ref, o_ref):
    """Fused fc1+relu+dropout -> fc2+relu+dropout -> fc3 for one batch tile."""
    tm = x_ref.shape[0]

    if training:
        seed_u32 = seed_ref[0].astype(jnp.uint32)
        row_off = (pl.program_id(0) * tm).astype(jnp.uint32)
    else:
        seed_u32 = None
        row_off = None

    x = x_ref[...]                                            # bf16 (TM, 896)

    h1 = jnp.dot(x, w1_ref[...],
                 preferred_element_type=jnp.float32) + b1_ref[...]
    h1 = _dropout(jnp.maximum(h1, 0.0), seed_u32, row_off, 1, training)

    h2 = jnp.dot(h1.astype(jnp.bfloat16), w2_ref[...],
                 preferred_element_type=jnp.float32) + b2_ref[...]
    h2 = _dropout(jnp.maximum(h2, 0.0), seed_u32, row_off, 2, training)

    o_ref[...] = (jnp.dot(h2.astype(jnp.bfloat16), w3_ref[...],
                          preferred_element_type=jnp.float32) + b3_ref[...])


def _pick_tm(b):
    if b >= 256:
        return 256
    return max(8, ((b + 7) // 8) * 8)


def mlp_forward(x, params, *, seed=0, training=False):
    """x: (B, 1, 28, 28) or (B, 784). Returns (B, 10) float32."""
    w1, b1, w2, b2, w3, b3 = params
    b = x.shape[0]
    x2 = x.reshape(b, 28 * 28).astype(jnp.float32)

    tm = _pick_tm(b)
    b_pad = pl.cdiv(b, tm) * tm

    # Zero-pad to lane-aligned shapes; cast matmul operands to bf16.
    x_p = jnp.zeros((b_pad, K_PAD), jnp.bfloat16)
    x_p = x_p.at[:b, :28 * 28].set(x2.astype(jnp.bfloat16))
    w1_p = jnp.zeros((K_PAD, 512), jnp.bfloat16).at[:28 * 28].set(
        w1.astype(jnp.bfloat16))
    w2_b = w2.astype(jnp.bfloat16)
    w3_p = jnp.zeros((256, N_OUT_PAD), jnp.bfloat16).at[:, :10].set(
        w3.astype(jnp.bfloat16))
    b1_f = b1.astype(jnp.float32).reshape(1, 512)
    b2_f = b2.astype(jnp.float32).reshape(1, 256)
    b3_p = jnp.zeros((1, N_OUT_PAD), jnp.float32).at[:, :10].set(
        b3.astype(jnp.float32).reshape(1, 10))

    seed_arr = jnp.asarray([seed], dtype=jnp.int32)

    grid = (b_pad // tm,)
    flops = 2 * b_pad * (K_PAD * 512 + 512 * 256 + 256 * N_OUT_PAD)
    bytes_accessed = (x_p.size * 2 + w1_p.size * 2 + w2_b.size * 2
                      + w3_p.size * 2
                      + (b1_f.size + b2_f.size + b3_p.size) * 4
                      + b_pad * N_OUT_PAD * 4 + 4)

    out_pad = pl.pallas_call(
        functools.partial(mlp_kernel, training),
        out_shape=jax.ShapeDtypeStruct((b_pad, N_OUT_PAD), jnp.float32),
        grid=grid,
        in_specs=[
            pl.BlockSpec((1,), lambda i: (0,),
                         memory_space=pltpu.MemorySpace.SMEM),       # seed
            pl.BlockSpec((tm, K_PAD), lambda i: (i, 0)),              # x tile
            pl.BlockSpec((K_PAD, 512), lambda i: (0, 0)),             # w1 (resident)
            pl.BlockSpec((1, 512), lambda i: (0, 0)),                 # b1
            pl.BlockSpec((512, 256), lambda i: (0, 0)),               # w2
            pl.BlockSpec((1, 256), lambda i: (0, 0)),                 # b2
            pl.BlockSpec((256, N_OUT_PAD), lambda i: (0, 0)),         # w3 (padded)
            pl.BlockSpec((1, N_OUT_PAD), lambda i: (0, 0)),           # b3 (padded)
        ],
        out_specs=pl.BlockSpec((tm, N_OUT_PAD), lambda i: (i, 0)),
        compiler_params=pltpu.CompilerParams(
            dimension_semantics=("parallel",)),
        cost_estimate=pl.CostEstimate(
            flops=flops, transcendentals=0, bytes_accessed=bytes_accessed),
    )(seed_arr, x_p, w1_p, b1_f, w2_b, b2_f, w3_p, b3_p)

    return out_pad[:b, :10]


def init_params(key):
    """PyTorch-style nn.Linear init (uniform +-1/sqrt(fan_in)); W as (in, out)."""
    dims = [(28 * 28, 512), (512, 256), (256, 10)]
    params = []
    for fan_in, fan_out in dims:
        key, kw, kb = jax.random.split(key, 3)
        bound = 1.0 / (fan_in ** 0.5)
        w = jax.random.uniform(kw, (fan_in, fan_out), jnp.float32,
                               minval=-bound, maxval=bound)
        bias = jax.random.uniform(kb, (1, fan_out), jnp.float32,
                                  minval=-bound, maxval=bound)
        params += [w, bias]
    return tuple(params)


def mlp_reference(x, params):
    """Pure-JAX reference (eval mode; bf16 operands, f32 accumulation)."""
    b = x.shape[0]
    w1, b1, w2, b2, w3, b3 = params
    h = x.reshape(b, 28 * 28).astype(jnp.bfloat16)
    h = jnp.maximum(
        jnp.dot(h, w1.astype(jnp.bfloat16),
                preferred_element_type=jnp.float32) + b1, 0.0)
    h = jnp.maximum(
        jnp.dot(h.astype(jnp.bfloat16), w2.astype(jnp.bfloat16),
                preferred_element_type=jnp.float32) + b2, 0.0)
    return jnp.dot(h.astype(jnp.bfloat16), w3.astype(jnp.bfloat16),
                   preferred_element_type=jnp.float32) + b3


if __name__ == "__main__":
    key = jax.random.PRNGKey(0)
    key, kx = jax.random.split(key)

    batch = 2
    x = jax.random.normal(kx, (batch, 1, 28, 28), dtype=jnp.float32)
    params = init_params(key)

    # Eval mode (dropout == identity), checked against the pure-JAX reference.
    out = jax.block_until_ready(mlp_forward(x, params, training=False))
    ref = mlp_reference(x, params)
    assert out.shape == (batch, 10), out.shape
    assert jnp.allclose(out, ref, atol=1e-2, rtol=1e-2), (
        float(jnp.max(jnp.abs(out - ref))))

    # Training mode (hash-based in-kernel dropout) — exercise once for shape /
    # finiteness; the mask is pseudo-random so no exact reference is checked.
    out_train = jax.block_until_ready(
        mlp_forward(x, params, seed=123, training=True))
    assert out_train.shape == (batch, 10)
    assert bool(jnp.all(jnp.isfinite(out_train)))

    print("KERNEL_OK")
</pallas_src>

<mosaic_0001>
module attributes {stable_mosaic.version = 11 : i64} {
  func.func @mlp_kernel(%arg0: i32, %arg1: memref<1xi32, #tpu.memory_space<smem>>, %arg2: memref<8x896xbf16, #tpu.memory_space<vmem>>, %arg3: memref<896x512xbf16, #tpu.memory_space<vmem>>, %arg4: memref<1x512xf32, #tpu.memory_space<vmem>>, %arg5: memref<512x256xbf16, #tpu.memory_space<vmem>>, %arg6: memref<1x256xf32, #tpu.memory_space<vmem>>, %arg7: memref<256x128xbf16, #tpu.memory_space<vmem>>, %arg8: memref<1x128xf32, #tpu.memory_space<vmem>>, %arg9: memref<8x128xf32, #tpu.memory_space<vmem>>) attributes {dimension_semantics = [#tpu.dimension_semantics<parallel>], iteration_bounds = array<i64: 1>, scalar_prefetch = 0 : i64, scratch_operands = 0 : i64, tpu.core_type = #tpu.core_type<tc>, window_params = [{transform_indices = @transform_0, window_bounds = array<i64: 1>}, {transform_indices = @transform_1, window_bounds = array<i64: 8, 896>}, {pipeline_mode = #tpu.pipeline_mode<synchronous>, transform_indices = @transform_2, window_bounds = array<i64: 896, 512>}, {pipeline_mode = #tpu.pipeline_mode<synchronous>, transform_indices = @transform_3, window_bounds = array<i64: 1, 512>}, {pipeline_mode = #tpu.pipeline_mode<synchronous>, transform_indices = @transform_4, window_bounds = array<i64: 512, 256>}, {pipeline_mode = #tpu.pipeline_mode<synchronous>, transform_indices = @transform_5, window_bounds = array<i64: 1, 256>}, {pipeline_mode = #tpu.pipeline_mode<synchronous>, transform_indices = @transform_6, window_bounds = array<i64: 256, 128>}, {pipeline_mode = #tpu.pipeline_mode<synchronous>, transform_indices = @transform_7, window_bounds = array<i64: 1, 128>}, {transform_indices = @transform_8, window_bounds = array<i64: 8, 128>}]} {
    %c0 = arith.constant 0 : index
    %c0_0 = arith.constant 0 : index
    %0 = vector.load %arg2[%c0, %c0_0] : memref<8x896xbf16, #tpu.memory_space<vmem>>, vector<8x896xbf16>
    %c0_1 = arith.constant 0 : index
    %c0_2 = arith.constant 0 : index
    %1 = vector.load %arg3[%c0_1, %c0_2] : memref<896x512xbf16, #tpu.memory_space<vmem>>, vector<896x512xbf16>
    %cst = arith.constant dense<0.000000e+00> : vector<8x512xf32>
    %2 = tpu.matmul %0, %1, %cst {dimension_numbers = #tpu.dot_dimension_numbers<[1], [0], [0], [1], [0, 0, 1, 1], [], []>} : vector<8x896xbf16>, vector<896x512xbf16>, vector<8x512xf32> -> vector<8x512xf32>
    %c0_3 = arith.constant 0 : index
    %c0_4 = arith.constant 0 : index
    %3 = vector.load %arg4[%c0_3, %c0_4] : memref<1x512xf32, #tpu.memory_space<vmem>>, vector<1x512xf32>
    %4 = vector.broadcast %3 : vector<1x512xf32> to vector<8x512xf32>
    %5 = arith.addf %2, %4 : vector<8x512xf32>
    %cst_5 = arith.constant 0.000000e+00 : f32
    %6 = vector.broadcast %cst_5 : f32 to vector<8x512xf32>
    %7 = arith.maximumf %5, %6 : vector<8x512xf32>
    %8 = arith.truncf %7 : vector<8x512xf32> to vector<8x512xbf16>
    %c0_6 = arith.constant 0 : index
    %c0_7 = arith.constant 0 : index
    %9 = vector.load %arg5[%c0_6, %c0_7] : memref<512x256xbf16, #tpu.memory_space<vmem>>, vector<512x256xbf16>
    %cst_8 = arith.constant dense<0.000000e+00> : vector<8x256xf32>
    %10 = tpu.matmul %8, %9, %cst_8 {dimension_numbers = #tpu.dot_dimension_numbers<[1], [0], [0], [1], [0, 0, 1, 1], [], []>} : vector<8x512xbf16>, vector<512x256xbf16>, vector<8x256xf32> -> vector<8x256xf32>
    %c0_9 = arith.constant 0 : index
    %c0_10 = arith.constant 0 : index
    %11 = vector.load %arg6[%c0_9, %c0_10] : memref<1x256xf32, #tpu.memory_space<vmem>>, vector<1x256xf32>
    %12 = vector.broadcast %11 : vector<1x256xf32> to vector<8x256xf32>
    %13 = arith.addf %10, %12 : vector<8x256xf32>
    %cst_11 = arith.constant 0.000000e+00 : f32
    %14 = vector.broadcast %cst_11 : f32 to vector<8x256xf32>
    %15 = arith.maximumf %13, %14 : vector<8x256xf32>
    %16 = arith.truncf %15 : vector<8x256xf32> to vector<8x256xbf16>
    %c0_12 = arith.constant 0 : index
    %c0_13 = arith.constant 0 : index
    %17 = vector.load %arg7[%c0_12, %c0_13] : memref<256x128xbf16, #tpu.memory_space<vmem>>, vector<256x128xbf16>
    %cst_14 = arith.constant dense<0.000000e+00> : vector<8x128xf32>
    %18 = tpu.matmul %16, %17, %cst_14 {dimension_numbers = #tpu.dot_dimension_numbers<[1], [0], [0], [1], [0, 0, 1, 1], [], []>} : vector<8x256xbf16>, vector<256x128xbf16>, vector<8x128xf32> -> vector<8x128xf32>
    %c0_15 = arith.constant 0 : index
    %c0_16 = arith.constant 0 : index
    %19 = vector.load %arg8[%c0_15, %c0_16] : memref<1x128xf32, #tpu.memory_space<vmem>>, vector<1x128xf32>
    %20 = vector.broadcast %19 : vector<1x128xf32> to vector<8x128xf32>
    %21 = arith.addf %18, %20 : vector<8x128xf32>
    %c0_17 = arith.constant 0 : index
    %c0_18 = arith.constant 0 : index
    %22 = vector.load %arg9[%c0_17, %c0_18] : memref<8x128xf32, #tpu.memory_space<vmem>>, vector<8x128xf32>
    tpu.vector_store %arg9[%c0_17, %c0_18], %21 {strides = array<i32>} : memref<8x128xf32, #tpu.memory_space<vmem>>, vector<8x128xf32>,
    return
  }
  func.func @transform_0(%arg0: i32) -> i32 {
    %c0_i32 = arith.constant 0 : i32
    %c0_i32_0 = arith.constant 0 : i32
    return %c0_i32 : i32
  }
  func.func @transform_1(%arg0: i32) -> (i32, i32) {
    %c0_i32 = arith.constant 0 : i32
    %c0_i32_0 = arith.constant 0 : i32
    return %arg0, %c0_i32 : i32, i32
  }
  func.func @transform_2(%arg0: i32) -> (i32, i32) {
    %c0_i32 = arith.constant 0 : i32
    %c0_i32_0 = arith.constant 0 : i32
    %c0_i32_1 = arith.constant 0 : i32
    return %c0_i32, %c0_i32_0 : i32, i32
  }
  func.func @transform_3(%arg0: i32) -> (i32, i32) {
    %c0_i32 = arith.constant 0 : i32
    %c0_i32_0 = arith.constant 0 : i32
    %c0_i32_1 = arith.constant 0 : i32
    return %c0_i32, %c0_i32_0 : i32, i32
  }
  func.func @transform_4(%arg0: i32) -> (i32, i32) {
    %c0_i32 = arith.constant 0 : i32
    %c0_i32_0 = arith.constant 0 : i32
    %c0_i32_1 = arith.constant 0 : i32
    return %c0_i32, %c0_i32_0 : i32, i32
  }
  func.func @transform_5(%arg0: i32) -> (i32, i32) {
    %c0_i32 = arith.constant 0 : i32
    %c0_i32_0 = arith.constant 0 : i32
    %c0_i32_1 = arith.constant 0 : i32
    return %c0_i32, %c0_i32_0 : i32, i32
  }
  func.func @transform_6(%arg0: i32) -> (i32, i32) {
    %c0_i32 = arith.constant 0 : i32
    %c0_i32_0 = arith.constant 0 : i32
    %c0_i32_1 = arith.constant 0 : i32
    return %c0_i32, %c0_i32_0 : i32, i32
  }
  func.func @transform_7(%arg0: i32) -> (i32, i32) {
    %c0_i32 = arith.constant 0 : i32
    %c0_i32_0 = arith.constant 0 : i32
    %c0_i32_1 = arith.constant 0 : i32
    return %c0_i32, %c0_i32_0 : i32, i32
  }
  func.func @transform_8(%arg0: i32) -> (i32, i32) {
    %c0_i32 = arith.constant 0 : i32
    %c0_i32_0 = arith.constant 0 : i32
    return %arg0, %c0_i32 : i32, i32
  }
}

</mosaic_0001>

<bundles_post_ra>
// kernel: tpu_custom_call.1
= control target key start
LH: loop header
LB: loop body
LE: loop exit
PB: predicated region body
PF: predicated region fallthrough
CT: control target
= control target key end

     0   :  { %14 = vsyncpa [#allocation4], 0  ;;  %s3624_s0 = inlined_call_operand.<no memory space> [shape: s32[1], index: 0, kind: input, shape index: {}]   ;;  %s3625_s1 = inlined_call_operand.hbm [shape: bf16[8,896], index: 1, kind: input, shape index: {}]   ;;  %s3626_s2 = inlined_call_operand.hbm [shape: bf16[896,512], index: 2, kind: input, shape index: {}]   ;;  %s3627_s3 = inlined_call_operand.vmem [shape: f32[1,512], index: 3, kind: input, shape index: {}]   ;;  %s3628_s4 = inlined_call_operand.hbm [shape: bf16[512,256], index: 4, kind: input, shape index: {}]   ;;  %s3629_s5 = inlined_call_operand.vmem [shape: f32[1,256], index: 5, kind: input, shape index: {}]   ;;  %s3630_s6 = inlined_call_operand.hbm [shape: bf16[256,128], index: 6, kind: input, shape index: {}]   ;;  %s3631_s7 = inlined_call_operand.vmem [shape: f32[1,128], index: 7, kind: input, shape index: {}]   ;;  %s3632_s8 = inlined_call_operand.hbm [shape: f32[8,128], index: 8, kind: output, shape index: {}]  }
   0x1   :  { %15 = vsyncpa [#allocation7], 0 }
   0x2   :  { %16 = vsyncpa [#allocation10], 0 }
   0x3   :  { %17 = vsyncpa [#allocation5], 0  ;;  %s3442_s26 = smov [#allocation6]   ;;  %s3324_s30 = scalar_lea.hbm %s3626_s2, 28672 }
   0x4   :  { %s35_s27 = sshll.u32 %s3442_s26, 4  ;;  %p3325_p0 = scmp.ne.s32.totalorder %s3626_s2, %s3324_s30  ;;  %s36_s27 = int_to_ptr.vmem [resolvable:$true] %s35_s27 }
   0x5   :  { %p3328_p1 = scmp.lt.u32.totalorder %s3324_s30, %s3626_s2 }
   0x7   :  { %p3330_p2 = pnand %p3328_p1, %p3325_p0 }
   0x9   :  { %3333 = shalt.err (!%p3330_p2)
}
   0xa   :  { %s3334_s13 = scalar_lea.vmem %s36_s27, 28672  ;;  %p3339_p4 = scmp.lt.s32.totalorder %s36_s27, %s36_s27 }
   0xb   :  { %p3335_p3 = scmp.ne.s32.totalorder %s36_s27, %s3334_s13  ;;  %p3340_p5 = scmp.lt.s32.totalorder %s3334_s13, %s3334_s13 }
   0xd   :  { %p3341_p6 = por %p3340_p5, %p3339_p4 }
   0xf   :  { %p3342_p7 = pnand %p3341_p6, %p3335_p3 }
  0x11   :  { %3345 = shalt.err (!%p3342_p7)
}
  0x12   :  { %s3443_s14 = smov 256   ;;  %s3444_s15 = smov 16  }
  0x13   :  { %41 = dma.hbm_to_vmem [thread:$0]  %s3626_s2, 28672, %s36_s27, [#allocation7], %s3443_s14, %s3443_s14, %s3444_s15  }
  0x14   :  { %s3445_s18 = smov [#allocation3]   ;;  %s3446_s20 = smov [#allocation8]  }
  0x15   :  { %s26_s19 = sshll.u32 %s3445_s18, 4  ;;  %s49_s21 = sshll.u32 %s3446_s20, 4  ;;  %s27_s19 = int_to_ptr.vmem [resolvable:$true] %s26_s19  ;;  %s50_s21 = int_to_ptr.vmem [resolvable:$true] %s49_s21 }
  0x16   :  { %s3346_s0 = scalar_lea.hbm %s3625_s1, 448 }
  0x17   :  { %p3347_p8 = scmp.ne.s32.totalorder %s3625_s1, %s3346_s0  ;;  %p3350_p9 = scmp.lt.u32.totalorder %s3346_s0, %s3625_s1 }
  0x19   :  { %p3352_p10 = pnand %p3350_p9, %p3347_p8 }
  0x1b   :  { %3355 = shalt.err (!%p3352_p10)
}
  0x1c   :  { %s3356_s2 = scalar_lea.vmem %s27_s19, 448  ;;  %p3361_p12 = scmp.lt.s32.totalorder %s27_s19, %s27_s19 }
  0x1d   :  { %p3357_p11 = scmp.ne.s32.totalorder %s27_s19, %s3356_s2  ;;  %p3362_p13 = scmp.lt.s32.totalorder %s3356_s2, %s3356_s2 }
  0x1f   :  { %p3363_p0 = por %p3362_p13, %p3361_p12 }
  0x21   :  { %p3364_p1 = pnand %p3363_p0, %p3357_p11 }
  0x23   :  { %3367 = shalt.err (!%p3364_p1)
}
  0x24   :  { %29 = dma.hbm_to_vmem [thread:$0]  %s3625_s1, 448, %s27_s19, [#allocation4]  }
  0x25   :  { %s3368_s10 = scalar_lea.hbm %s3628_s4, 8192 }
  0x26   :  { %p3369_p2 = scmp.ne.s32.totalorder %s3628_s4, %s3368_s10  ;;  %p3372_p3 = scmp.lt.u32.totalorder %s3368_s10, %s3628_s4 }
  0x28   :  { %p3374_p4 = pnand %p3372_p3, %p3369_p2 }
  0x2a   :  { %3377 = shalt.err (!%p3374_p4)
}
  0x2b   :  { %s3378_s15 = scalar_lea.vmem %s50_s21, 8192  ;;  %p3383_p6 = scmp.lt.s32.totalorder %s50_s21, %s50_s21 }
  0x2c   :  { %p3379_p5 = scmp.ne.s32.totalorder %s50_s21, %s3378_s15  ;;  %p3384_p7 = scmp.lt.s32.totalorder %s3378_s15, %s3378_s15 }
  0x2e   :  { %p3385_p8 = por %p3384_p7, %p3383_p6 }
  0x30   :  { %p3386_p9 = pnand %p3385_p8, %p3379_p5 }
  0x32   :  { %3389 = shalt.err (!%p3386_p9)
}
  0x33   :  { %s3447_s1 = smov 128   ;;  %s3448_s16 = smov 8  }
  0x34   :  { %55 = dma.hbm_to_vmem [thread:$0]  %s3628_s4, 8192, %s50_s21, [#allocation7], %s3447_s1, %s3447_s1, %s3448_s16  }
  0x35   :  { %s3449_s19 = smov [#allocation9]   ;;  %s3390_s0 = scalar_lea.hbm %s3630_s6, 2048 }
  0x36   :  { %s63_s20 = sshll.u32 %s3449_s19, 4  ;;  %p3391_p10 = scmp.ne.s32.totalorder %s3630_s6, %s3390_s0  ;;  %s64_s20 = int_to_ptr.vmem [resolvable:$true] %s63_s20 }
  0x37   :  { %p3394_p11 = scmp.lt.u32.totalorder %s3390_s0, %s3630_s6 }
  0x39   :  { %p3396_p12 = pnand %p3394_p11, %p3391_p10 }
  0x3b   :  { %3399 = shalt.err (!%p3396_p12)
}
  0x3c   :  { %s3400_s2 = scalar_lea.vmem %s64_s20, 2048  ;;  %p3405_p0 = scmp.lt.s32.totalorder %s64_s20, %s64_s20 }
  0x3d   :  { %p3401_p13 = scmp.ne.s32.totalorder %s64_s20, %s3400_s2  ;;  %p3406_p1 = scmp.lt.s32.totalorder %s3400_s2, %s3400_s2 }
  0x3f   :  { %p3407_p2 = por %p3406_p1, %p3405_p0 }
  0x41   :  { %p3408_p3 = pnand %p3407_p2, %p3401_p13 }
  0x43   :  { %3411 = shalt.err (!%p3408_p3)
}
  0x44   :  { %s3450_s4 = smov 64   ;;  %s3451_s21 = smov 4  }
  0x45   :  { %69 = dma.hbm_to_vmem [thread:$0]  %s3630_s6, 2048, %s64_s20, [#allocation10], %s3450_s4, %s3450_s4, %s3451_s21  }
  0x46   :  { %3434 = dma.done.wait [#allocation4], 448  }
  0x47   :  { %3435 = vsyncadd [#allocation4], 4294966848 }
  0x48   :  { %3436 = dma.done.wait [#allocation7], 36864  }
  0x49   :  { %3437 = vsyncadd [#allocation7], 4294930432 }
  0x4a   :  { %3438 = dma.done.wait [#allocation10], 2048  }
  0x4b   :  { %3439 = vsyncadd [#allocation10], 4294965248  ;;  %v2869_v0 = vld [vmem:[#allocation6 + $0x4] ss:$16 sps:$4 sm:$0xff]   ;;  %v2873_v2 = vld [vmem:[#allocation6] ss:$16 sps:$4 sm:$0xff]  }
  0x4c   :  { %v2871_v1 = vld [vmem:[#allocation6 + $0x204] ss:$16 sps:$4 sm:$0xff]   ;;  %1480 = vmatprep.subr.bf16.mxu1 %v2869_v0  ;;  %v2874_v3 = vld [vmem:[#allocation6 + $0x200] ss:$16 sps:$4 sm:$0xff]   ;;  %s3453_s11 = smov [#allocation11]  }
  0x4d   :  { %1521 = vmatprep.subr.bf16.mxu0 %v2871_v1  ;;  %v2875_v4 = vld [vmem:[#allocation6 + $0x24] ss:$16 sps:$4 sm:$0xff]   ;;  %1481 = vmatpush1.bf16.msra.mxu1 %v2873_v2  ;;  %v2879_v6 = vld [vmem:[#allocation6 + $0x20] ss:$16 sps:$4 sm:$0xff]   ;;  %s2480_s12 = sshll.u32 %s3453_s11, 4  ;;  %s2481_s12 = int_to_ptr.vmem [resolvable:$true] %s2480_s12 }
  0x4e   :  { %1522 = vmatpush1.bf16.msra.mxu0 %v2874_v3  ;;  %v2877_v5 = vld [vmem:[#allocation6 + $0x224] ss:$16 sps:$4 sm:$0xff]   ;;  %1482 = vmatprep.subr.bf16.mxu1 %v2875_v4  ;;  %v2880_v7 = vld [vmem:[#allocation6 + $0x220] ss:$16 sps:$4 sm:$0xff]   ;;  %s3412_s13 = scalar_lea.vmem %s2481_s12, 128  ;;  %p3417_p5 = scmp.lt.s32.totalorder %s2481_s12, %s2481_s12 }
  0x4f   :  { %1523 = vmatprep.subr.bf16.mxu0 %v2877_v5  ;;  %v2881_v8 = vld [vmem:[#allocation6 + $0x44] ss:$16 sps:$4 sm:$0xff]   ;;  %v2885_v10 = vld [vmem:[#allocation6 + $0x40] ss:$16 sps:$4 sm:$0xff]   ;;  %v2974_v5 = vld [vmem:[#allocation6 + $0xc] ss:$16 sps:$4 sm:$0xff]   ;;  %p3413_p4 = scmp.ne.s32.totalorder %s2481_s12, %s3412_s13  ;;  %p3418_p6 = scmp.lt.s32.totalorder %s3412_s13, %s3412_s13 }
  0x50   :  { %v2883_v9 = vld [vmem:[#allocation6 + $0x244] ss:$16 sps:$4 sm:$0xff]   ;;  %v2886_v11 = vld [vmem:[#allocation6 + $0x240] ss:$16 sps:$4 sm:$0xff]  }
  0x51   :  { %1483 = vmatpush1.bf16.msra.mxu1 %v2879_v6  ;;  %v2887_v12 = vld [vmem:[#allocation6 + $0x64] ss:$16 sps:$4 sm:$0xff]   ;;  %v2891_v14 = vld [vmem:[#allocation6 + $0x60] ss:$16 sps:$4 sm:$0xff]   ;;  %p3419_p7 = por %p3418_p6, %p3417_p5 }
  0x52   :  { %1524 = vmatpush1.bf16.msra.mxu0 %v2880_v7  ;;  %1484 = vmatprep.subr.bf16.mxu1 %v2881_v8  ;;  %v2889_v13 = vld [vmem:[#allocation6 + $0x264] ss:$16 sps:$4 sm:$0xff]   ;;  %v2892_v15 = vld [vmem:[#allocation6 + $0x260] ss:$16 sps:$4 sm:$0xff]  }
  0x53   :  { %1525 = vmatprep.subr.bf16.mxu0 %v2883_v9  ;;  %v2893_v16 = vld [vmem:[#allocation6 + $0x84] ss:$16 sps:$4 sm:$0xff]   ;;  %v2897_v18 = vld [vmem:[#allocation6 + $0x80] ss:$16 sps:$4 sm:$0xff]   ;;  %v2972_v9 = vld [vmem:[#allocation6 + $0x8] ss:$16 sps:$4 sm:$0xff]   ;;  %p3420_p8 = pnand %p3419_p7, %p3413_p4 }
  0x54   :  { %v2895_v17 = vld [vmem:[#allocation6 + $0x284] ss:$16 sps:$4 sm:$0xff]   ;;  %v2898_v19 = vld [vmem:[#allocation6 + $0x280] ss:$16 sps:$4 sm:$0xff]  }
  0x55   :  { %1485 = vmatpush1.bf16.msra.mxu1 %v2885_v10  ;;  %v2899_v20 = vld [vmem:[#allocation6 + $0xa4] ss:$16 sps:$4 sm:$0xff]   ;;  %v2903_v22 = vld [vmem:[#allocation6 + $0xa0] ss:$16 sps:$4 sm:$0xff]  }
  0x56   :  { %1526 = vmatpush1.bf16.msra.mxu0 %v2886_v11  ;;  %1486 = vmatprep.subr.bf16.mxu1 %v2887_v12  ;;  %v2901_v21 = vld [vmem:[#allocation6 + $0x2a4] ss:$16 sps:$4 sm:$0xff]   ;;  %v2904_v23 = vld [vmem:[#allocation6 + $0x2a0] ss:$16 sps:$4 sm:$0xff]   ;;  %v2980_v11 = vld [vmem:[#allocation6 + $0x2c] ss:$16 sps:$4 sm:$0xff]  }
  0x57   :  { %1527 = vmatprep.subr.bf16.mxu0 %v2889_v13  ;;  %v2905_v24 = vld [vmem:[#allocation6 + $0xc4] ss:$16 sps:$4 sm:$0xff]   ;;  %v2909_v26 = vld [vmem:[#allocation6 + $0xc0] ss:$16 sps:$4 sm:$0xff]   ;;  %v2978_v13 = vld [vmem:[#allocation6 + $0x28] ss:$16 sps:$4 sm:$0xff]  }
  0x58   :  { %v2907_v25 = vld [vmem:[#allocation6 + $0x2c4] ss:$16 sps:$4 sm:$0xff]   ;;  %v2910_v27 = vld [vmem:[#allocation6 + $0x2c0] ss:$16 sps:$4 sm:$0xff]  }
  0x59   :  { %1487 = vmatpush1.bf16.msra.mxu1 %v2891_v14  ;;  %v2911_v28 = vld [vmem:[#allocation6 + $0xe4] ss:$16 sps:$4 sm:$0xff]   ;;  %v2915_v30 = vld [vmem:[#allocation6 + $0xe0] ss:$16 sps:$4 sm:$0xff]  }
  0x5a   :  { %1528 = vmatpush1.bf16.msra.mxu0 %v2892_v15  ;;  %1488 = vmatprep.subr.bf16.mxu1 %v2893_v16  ;;  %v2913_v29 = vld [vmem:[#allocation6 + $0x2e4] ss:$16 sps:$4 sm:$0xff]   ;;  %v2916_v31 = vld [vmem:[#allocation6 + $0x2e0] ss:$16 sps:$4 sm:$0xff]   ;;  %v2986_v15 = vld [vmem:[#allocation6 + $0x4c] ss:$16 sps:$4 sm:$0xff]  }
  0x5b   :  { %1529 = vmatprep.subr.bf16.mxu0 %v2895_v17  ;;  %v2917_v32 = vld [vmem:[#allocation6 + $0x104] ss:$16 sps:$4 sm:$0xff]   ;;  %v2921_v34 = vld [vmem:[#allocation6 + $0x100] ss:$16 sps:$4 sm:$0xff]   ;;  %v2984_v17 = vld [vmem:[#allocation6 + $0x48] ss:$16 sps:$4 sm:$0xff]  }
  0x5c   :  { %v2919_v33 = vld [vmem:[#allocation6 + $0x304] ss:$16 sps:$4 sm:$0xff]   ;;  %v2922_v35 = vld [vmem:[#allocation6 + $0x300] ss:$16 sps:$4 sm:$0xff]  }
  0x5d   :  { %1489 = vmatpush1.bf16.msra.mxu1 %v2897_v18  ;;  %v2923_v36 = vld [vmem:[#allocation6 + $0x124] ss:$16 sps:$4 sm:$0xff]   ;;  %v2927_v38 = vld [vmem:[#allocation6 + $0x120] ss:$16 sps:$4 sm:$0xff]  }
  0x5e   :  { %1530 = vmatpush1.bf16.msra.mxu0 %v2898_v19  ;;  %1490 = vmatprep.subr.bf16.mxu1 %v2899_v20  ;;  %v2925_v37 = vld [vmem:[#allocation6 + $0x324] ss:$16 sps:$4 sm:$0xff]   ;;  %v2928_v39 = vld [vmem:[#allocation6 + $0x320] ss:$16 sps:$4 sm:$0xff]   ;;  %v2992_v19 = vld [vmem:[#allocation6 + $0x6c] ss:$16 sps:$4 sm:$0xff]  }
  0x5f   :  { %1531 = vmatprep.subr.bf16.mxu0 %v2901_v21  ;;  %v2929_v40 = vld [vmem:[#allocation6 + $0x144] ss:$16 sps:$4 sm:$0xff]   ;;  %v2933_v42 = vld [vmem:[#allocation6 + $0x140] ss:$16 sps:$4 sm:$0xff]   ;;  %v2990_v21 = vld [vmem:[#allocation6 + $0x68] ss:$16 sps:$4 sm:$0xff]  }
  0x60   :  { %v2931_v41 = vld [vmem:[#allocation6 + $0x344] ss:$16 sps:$4 sm:$0xff]   ;;  %v2934_v43 = vld [vmem:[#allocation6 + $0x340] ss:$16 sps:$4 sm:$0xff]  }
  0x61   :  { %1491 = vmatpush1.bf16.msra.mxu1 %v2903_v22  ;;  %v2935_v44 = vld [vmem:[#allocation6 + $0x164] ss:$16 sps:$4 sm:$0xff]   ;;  %v86_v48 = vld [vmem:[#allocation3 + $0x8] sm:$0xff] }
  0x62   :  { %1532 = vmatpush1.bf16.msra.mxu0 %v2904_v23  ;;  %1492 = vmatprep.subr.bf16.mxu1 %v2905_v24  ;;  %v2937_v45 = vld [vmem:[#allocation6 + $0x364] ss:$16 sps:$4 sm:$0xff]   ;;  %v2939_v49 = vld [vmem:[#allocation6 + $0x160] ss:$16 sps:$4 sm:$0xff]   ;;  %v3549_v51 = vcombine.high %v86_v48, %v86_v48  ;;  %v3555_v7 = vcombine.low %v86_v48, %v86_v48  ;;  %v2998_v23 = vld [vmem:[#allocation6 + $0x8c] ss:$16 sps:$4 sm:$0xff]  }
  0x63   :  { %1533 = vmatprep.subr.bf16.mxu0 %v2907_v25  ;;  %v85_v46 = vld [vmem:[#allocation3] sm:$0xff]  ;;  %v2940_v50 = vld [vmem:[#allocation6 + $0x360] ss:$16 sps:$4 sm:$0xff]  }
  0x64   :  { %v3547_v47 = vcombine.high %v85_v46, %v85_v46  ;;  %v2941_v52 = vld [vmem:[#allocation6 + $0x184] ss:$16 sps:$4 sm:$0xff]   ;;  %1553 = vmatprep.mubr.bf16.mxu0 %v3549_v51  ;;  %v2945_v54 = vld [vmem:[#allocation6 + $0x180] ss:$16 sps:$4 sm:$0xff]   ;;  %v3553_v6 = vcombine.low %v85_v46, %v85_v46  ;;  %v2996_v25 = vld [vmem:[#allocation6 + $0x88] ss:$16 sps:$4 sm:$0xff]  }
  0x65   :  { %1493 = vmatpush1.bf16.msra.mxu1 %v2909_v26  ;;  %v2943_v53 = vld [vmem:[#allocation6 + $0x384] ss:$16 sps:$4 sm:$0xff]   ;;  %v2946_v55 = vld [vmem:[#allocation6 + $0x380] ss:$16 sps:$4 sm:$0xff]  }
  0x66   :  { %1534 = vmatpush1.bf16.msra.mxu0 %v2910_v27  ;;  %1494 = vmatprep.subr.bf16.mxu1 %v2911_v28  ;;  %v2947_v56 = vld [vmem:[#allocation6 + $0x1a4] ss:$16 sps:$4 sm:$0xff]   ;;  %v2951_v58 = vld [vmem:[#allocation6 + $0x1a0] ss:$16 sps:$4 sm:$0xff]   ;;  %v3004_v27 = vld [vmem:[#allocation6 + $0xac] ss:$16 sps:$4 sm:$0xff]  }
  0x67   :  { %1535 = vmatprep.subr.bf16.mxu0 %v2913_v29  ;;  %1512 = vmatprep.mubr.bf16.mxu1 %v3547_v47  ;;  %v2949_v57 = vld [vmem:[#allocation6 + $0x3a4] ss:$16 sps:$4 sm:$0xff]   ;;  %v2952_v59 = vld [vmem:[#allocation6 + $0x3a0] ss:$16 sps:$4 sm:$0xff]   ;;  %v3002_v29 = vld [vmem:[#allocation6 + $0xa8] ss:$16 sps:$4 sm:$0xff]  }
  0x68   :  { %v2953_v60 = vld [vmem:[#allocation6 + $0x1c4] ss:$16 sps:$4 sm:$0xff]   ;;  %v2957_v62 = vld [vmem:[#allocation6 + $0x1c0] ss:$16 sps:$4 sm:$0xff]  }
  0x69   :  { %1495 = vmatpush1.bf16.msra.mxu1 %v2915_v30  ;;  %v2955_v61 = vld [vmem:[#allocation6 + $0x3c4] ss:$16 sps:$4 sm:$0xff]   ;;  %v2958_v63 = vld [vmem:[#allocation6 + $0x3c0] ss:$16 sps:$4 sm:$0xff]  }
  0x6a   :  { %1536 = vmatpush1.bf16.msra.mxu0 %v2916_v31  ;;  %1496 = vmatprep.subr.bf16.mxu1 %v2917_v32  ;;  %v2959_v0 = vld [vmem:[#allocation6 + $0x1e4] ss:$16 sps:$4 sm:$0xff]   ;;  %v2963_v2 = vld [vmem:[#allocation6 + $0x1e0] ss:$16 sps:$4 sm:$0xff]   ;;  %v3010_v31 = vld [vmem:[#allocation6 + $0xcc] ss:$16 sps:$4 sm:$0xff]  }
  0x6b   :  { %1537 = vmatprep.subr.bf16.mxu0 %v2919_v33  ;;  %v2961_v1 = vld [vmem:[#allocation6 + $0x3e4] ss:$16 sps:$4 sm:$0xff]   ;;  %v2964_v3 = vld [vmem:[#allocation6 + $0x3e0] ss:$16 sps:$4 sm:$0xff]  }
  0x6c   :  { %v2971_v4 = vld [vmem:[#allocation6 + $0x404] ss:$16 sps:$4 sm:$0xff]   ;;  %v2969_v8 = vld [vmem:[#allocation6 + $0x400] ss:$16 sps:$4 sm:$0xff]  }
  0x6d   :  { %1497 = vmatpush1.bf16.msra.mxu1 %v2921_v34  ;;  %v2977_v10 = vld [vmem:[#allocation6 + $0x424] ss:$16 sps:$4 sm:$0xff]   ;;  %v2975_v12 = vld [vmem:[#allocation6 + $0x420] ss:$16 sps:$4 sm:$0xff]  }
  0x6e   :  { %1538 = vmatpush1.bf16.msra.mxu0 %v2922_v35  ;;  %1498 = vmatprep.subr.bf16.mxu1 %v2923_v36  ;;  %v2983_v14 = vld [vmem:[#allocation6 + $0x444] ss:$16 sps:$4 sm:$0xff]   ;;  %v2981_v16 = vld [vmem:[#allocation6 + $0x440] ss:$16 sps:$4 sm:$0xff]   ;;  %v3008_v35 = vld [vmem:[#allocation6 + $0xc8] ss:$16 sps:$4 sm:$0xff]  }
  0x6f   :  { %1539 = vmatprep.subr.bf16.mxu0 %v2925_v37  ;;  %v2989_v18 = vld [vmem:[#allocation6 + $0x464] ss:$16 sps:$4 sm:$0xff]   ;;  %v2987_v20 = vld [vmem:[#allocation6 + $0x460] ss:$16 sps:$4 sm:$0xff]   ;;  %v3016_v37 = vld [vmem:[#allocation6 + $0xec] ss:$16 sps:$4 sm:$0xff]  }
  0x70   :  { %v2995_v22 = vld [vmem:[#allocation6 + $0x484] ss:$16 sps:$4 sm:$0xff]   ;;  %v2993_v24 = vld [vmem:[#allocation6 + $0x480] ss:$16 sps:$4 sm:$0xff]  }
  0x71   :  { %1499 = vmatpush1.bf16.msra.mxu1 %v2927_v38  ;;  %v3001_v26 = vld [vmem:[#allocation6 + $0x4a4] ss:$16 sps:$4 sm:$0xff]   ;;  %v2999_v28 = vld [vmem:[#allocation6 + $0x4a0] ss:$16 sps:$4 sm:$0xff]  }
  0x72   :  { %1540 = vmatpush1.bf16.msra.mxu0 %v2928_v39  ;;  %1500 = vmatprep.subr.bf16.mxu1 %v2929_v40  ;;  %v3007_v30 = vld [vmem:[#allocation6 + $0x4c4] ss:$16 sps:$4 sm:$0xff]   ;;  %v3005_v33 = vld [vmem:[#allocation6 + $0x4c0] ss:$16 sps:$4 sm:$0xff]   ;;  %v3014_v39 = vld [vmem:[#allocation6 + $0xe8] ss:$16 sps:$4 sm:$0xff]  }
  0x73   :  { %1541 = vmatprep.subr.bf16.mxu0 %v2931_v41  ;;  %v3560_v32 = vld [vmem:[#allocation3 + $0x10] sm:$0xff]  ;;  %v3011_v38 = vld [vmem:[#allocation6 + $0x4e0] ss:$16 sps:$4 sm:$0xff]   ;;  %v3022_v41 = vld [vmem:[#allocation6 + $0x10c] ss:$16 sps:$4 sm:$0xff]  }
  0x74   :  { %v3564_v34 = vcombine.high %v3560_v32, %v3560_v32  ;;  %v3013_v36 = vld [vmem:[#allocation6 + $0x4e4] ss:$16 sps:$4 sm:$0xff]   ;;  %v3023_v46 = vld [vmem:[#allocation6 + $0x520] ss:$16 sps:$4 sm:$0xff]  }
  0x75   :  { %1501 = vmatpush1.bf16.msra.mxu1 %v2933_v42  ;;  %v3019_v40 = vld [vmem:[#allocation6 + $0x504] ss:$16 sps:$4 sm:$0xff]   ;;  %v3017_v42 = vld [vmem:[#allocation6 + $0x500] ss:$16 sps:$4 sm:$0xff]  }
  0x76   :  { %1542 = vmatpush1.bf16.msra.mxu0 %v2934_v43  ;;  %1502 = vmatprep.subr.bf16.mxu1 %v2935_v44  ;;  %v3020_v43 = vld [vmem:[#allocation6 + $0x108] ss:$16 sps:$4 sm:$0xff]   ;;  %v3025_v44 = vld [vmem:[#allocation6 + $0x524] ss:$16 sps:$4 sm:$0xff]  }
  0x77   :  { %1543 = vmatprep.subr.bf16.mxu0 %v2937_v45  ;;  %v3028_v45 = vld [vmem:[#allocation6 + $0x12c] ss:$16 sps:$4 sm:$0xff]   ;;  %v3031_v48 = vld [vmem:[#allocation6 + $0x544] ss:$16 sps:$4 sm:$0xff]  }
  0x79   :  { %1503 = vmatpush1.bf16.msra.mxu1 %v2939_v49  ;;  %v3034_v49 = vld [vmem:[#allocation6 + $0x14c] ss:$16 sps:$4 sm:$0xff]  }
  0x7a   :  { %1544 = vmatpush1.bf16.msra.mxu0 %v2940_v50  ;;  %1504 = vmatprep.subr.bf16.mxu1 %v2941_v52  ;;  %v3029_v50 = vld [vmem:[#allocation6 + $0x540] ss:$16 sps:$4 sm:$0xff]   ;;  %v3032_v52 = vld [vmem:[#allocation6 + $0x148] ss:$16 sps:$4 sm:$0xff]  }
  0x7b   :  { %1545 = vmatprep.subr.bf16.mxu0 %v2943_v53  ;;  %v3037_v53 = vld [vmem:[#allocation6 + $0x564] ss:$16 sps:$4 sm:$0xff]  }
  0x7d   :  { %1505 = vmatpush1.bf16.msra.mxu1 %v2945_v54  ;;  %v3040_v54 = vld [vmem:[#allocation6 + $0x16c] ss:$16 sps:$4 sm:$0xff]  }
  0x7e   :  { %1546 = vmatpush1.bf16.msra.mxu0 %v2946_v55  ;;  %1506 = vmatprep.subr.bf16.mxu1 %v2947_v56  ;;  %v3035_v55 = vld [vmem:[#allocation6 + $0x560] ss:$16 sps:$4 sm:$0xff]   ;;  %v3038_v56 = vld [vmem:[#allocation6 + $0x168] ss:$16 sps:$4 sm:$0xff]  }
  0x7f   :  { %1547 = vmatprep.subr.bf16.mxu0 %v2949_v57  ;;  %v3043_v57 = vld [vmem:[#allocation6 + $0x584] ss:$16 sps:$4 sm:$0xff]  }
  0x81   :  { %1507 = vmatpush1.bf16.msra.mxu1 %v2951_v58  ;;  %v3046_v58 = vld [vmem:[#allocation6 + $0x18c] ss:$16 sps:$4 sm:$0xff]  }
  0x82   :  { %1548 = vmatpush1.bf16.msra.mxu0 %v2952_v59  ;;  %1508 = vmatprep.subr.bf16.mxu1 %v2953_v60  ;;  %v3041_v59 = vld [vmem:[#allocation6 + $0x580] ss:$16 sps:$4 sm:$0xff]   ;;  %v3044_v60 = vld [vmem:[#allocation6 + $0x188] ss:$16 sps:$4 sm:$0xff]  }
  0x83   :  { %1549 = vmatprep.subr.bf16.mxu0 %v2955_v61  ;;  %v3049_v61 = vld [vmem:[#allocation6 + $0x5a4] ss:$16 sps:$4 sm:$0xff]  }
  0x85   :  { %1509 = vmatpush1.bf16.msra.mxu1 %v2957_v62  ;;  %v3052_v62 = vld [vmem:[#allocation6 + $0x1ac] ss:$16 sps:$4 sm:$0xff]  }
  0x86   :  { %1550 = vmatpush1.bf16.msra.mxu0 %v2958_v63  ;;  %1510 = vmatprep.subr.bf16.mxu1 %v2959_v0  ;;  %v3047_v63 = vld [vmem:[#allocation6 + $0x5a0] ss:$16 sps:$4 sm:$0xff]   ;;  %v3050_v0 = vld [vmem:[#allocation6 + $0x1a8] ss:$16 sps:$4 sm:$0xff]  }
  0x87   :  { %1551 = vmatprep.subr.bf16.mxu0 %v2961_v1  ;;  %v3055_v1 = vld [vmem:[#allocation6 + $0x5c4] ss:$16 sps:$4 sm:$0xff]  }
  0x89   :  { %1511 = vmatpush1.bf16.msra.mxu1 %v2963_v2  ;;  %v3058_v2 = vld [vmem:[#allocation6 + $0x1cc] ss:$16 sps:$4 sm:$0xff]  }
  0x8a   :  { %1552 = vmatpush1.bf16.msra.mxu0 %v2964_v3  ;;  %1644 = vmatprep.subr.bf16.mxu1 %v2974_v5  ;;  %v3053_v3 = vld [vmem:[#allocation6 + $0x5c0] ss:$16 sps:$4 sm:$0xff]   ;;  %v3061_v5 = vld [vmem:[#allocation6 + $0x5e4] ss:$16 sps:$4 sm:$0xff]  }
  0x8b   :  { %1562 = vmatprep.subr.bf16.mxu0 %v2971_v4  ;;  %v3056_v4 = vld [vmem:[#allocation6 + $0x1c8] ss:$16 sps:$4 sm:$0xff]  }
  0x8c   :  { %1513 = vmatmul.mubr.bf16.vlgmr.msra.gmra.mrb[0].mxu1 %v3553_v6 }
  0x8d   :  { %1554 = vmatmul.mubr.bf16.vlgmr.msra.gmra.mrb[0].mxu0 %v3555_v7  ;;  %1645 = vmatpush1.bf16.msra.mxu1 %v2972_v9  ;;  %v3059_v9 = vld [vmem:[#allocation6 + $0x5e0] ss:$16 sps:$4 sm:$0xff]  }
  0x8e   :  { %1563 = vmatpush1.bf16.msra.mxu0 %v2969_v8  ;;  %1646 = vmatprep.subr.bf16.mxu1 %v2980_v11  ;;  %v3064_v8 = vld [vmem:[#allocation6 + $0x1ec] ss:$16 sps:$4 sm:$0xff]   ;;  %v3069_v11 = vld [vmem:[#allocation6 + $0x604] ss:$16 sps:$4 sm:$0xff]  }
  0x8f   :  { %1564 = vmatprep.subr.bf16.mxu0 %v2977_v10  ;;  %1676 = vmatprep.mubr.bf16.mxu1 %v3547_v47  ;;  %v3026_v47 = vld [vmem:[#allocation6 + $0x128] ss:$16 sps:$4 sm:$0xff]  }
  0x90   :  { %1594 = vmatprep.mubr.bf16.mxu0 %v3564_v34  ;;  %v3062_v10 = vld [vmem:[#allocation6 + $0x1e8] ss:$16 sps:$4 sm:$0xff]  }
  0x91   :  { %1647 = vmatpush1.bf16.msra.mxu1 %v2978_v13  ;;  %v3569_v13 = vcombine.low %v3560_v32, %v3560_v32  ;;  %v3102_v32 = vld [vmem:[#allocation6 + $0x2ac] ss:$16 sps:$4 sm:$0xff]  }
  0x92   :  { %1565 = vmatpush1.bf16.msra.mxu0 %v2975_v12  ;;  %1648 = vmatprep.subr.bf16.mxu1 %v2986_v15  ;;  %v3072_v12 = vld [vmem:[#allocation6 + $0x20c] ss:$16 sps:$4 sm:$0xff]   ;;  %v3070_v15 = vld [vmem:[#allocation6 + $0x208] ss:$16 sps:$4 sm:$0xff]  }
  0x93   :  { %1566 = vmatprep.subr.bf16.mxu0 %v2983_v14  ;;  %v3067_v14 = vld [vmem:[#allocation6 + $0x600] ss:$16 sps:$4 sm:$0xff]  }
  0x95   :  { %1649 = vmatpush1.bf16.msra.mxu1 %v2984_v17  ;;  %v3078_v17 = vld [vmem:[#allocation6 + $0x22c] ss:$16 sps:$4 sm:$0xff]  }
  0x96   :  { %1567 = vmatpush1.bf16.msra.mxu0 %v2981_v16  ;;  %1650 = vmatprep.subr.bf16.mxu1 %v2992_v19  ;;  %v3075_v16 = vld [vmem:[#allocation6 + $0x624] ss:$16 sps:$4 sm:$0xff]   ;;  %v3076_v19 = vld [vmem:[#allocation6 + $0x228] ss:$16 sps:$4 sm:$0xff]  }
  0x97   :  { %1568 = vmatprep.subr.bf16.mxu0 %v2989_v18  ;;  %v3073_v18 = vld [vmem:[#allocation6 + $0x620] ss:$16 sps:$4 sm:$0xff]  }
  0x99   :  { %1651 = vmatpush1.bf16.msra.mxu1 %v2990_v21  ;;  %v3084_v21 = vld [vmem:[#allocation6 + $0x24c] ss:$16 sps:$4 sm:$0xff]  }
  0x9a   :  { %1569 = vmatpush1.bf16.msra.mxu0 %v2987_v20  ;;  %1652 = vmatprep.subr.bf16.mxu1 %v2998_v23  ;;  %v3081_v20 = vld [vmem:[#allocation6 + $0x644] ss:$16 sps:$4 sm:$0xff]   ;;  %v3079_v23 = vld [vmem:[#allocation6 + $0x640] ss:$16 sps:$4 sm:$0xff]  }
  0x9b   :  { %1570 = vmatprep.subr.bf16.mxu0 %v2995_v22  ;;  %v3452_v22 = vmov 0  }
  0x9d   :  { %1653 = vmatpush1.bf16.msra.mxu1 %v2996_v25  ;;  %v3090_v25 = vld [vmem:[#allocation6 + $0x26c] ss:$16 sps:$4 sm:$0xff]  }
  0x9e   :  { %1571 = vmatpush1.bf16.msra.mxu0 %v2993_v24  ;;  %1654 = vmatprep.subr.bf16.mxu1 %v3004_v27  ;;  %v3082_v24 = vld [vmem:[#allocation6 + $0x248] ss:$16 sps:$4 sm:$0xff]  }
  0x9f   :  { %1572 = vmatprep.subr.bf16.mxu0 %v3001_v26  ;;  %v3085_v26 = vld [vmem:[#allocation6 + $0x660] ss:$16 sps:$4 sm:$0xff]   ;;  %v3088_v27 = vld [vmem:[#allocation6 + $0x268] ss:$16 sps:$4 sm:$0xff]  }
  0xa1   :  { %1655 = vmatpush1.bf16.msra.mxu1 %v3002_v29  ;;  %v3096_v29 = vld [vmem:[#allocation6 + $0x28c] ss:$16 sps:$4 sm:$0xff]  }
  0xa2   :  { %1573 = vmatpush1.bf16.msra.mxu0 %v2999_v28  ;;  %1656 = vmatprep.subr.bf16.mxu1 %v3010_v31  ;;  %v3093_v28 = vld [vmem:[#allocation6 + $0x684] ss:$16 sps:$4 sm:$0xff]  }
  0xa3   :  { %1574 = vmatprep.subr.bf16.mxu0 %v3007_v30  ;;  %v3091_v30 = vld [vmem:[#allocation6 + $0x680] ss:$16 sps:$4 sm:$0xff]   ;;  %v3099_v31 = vld [vmem:[#allocation6 + $0x6a4] ss:$16 sps:$4 sm:$0xff]  }
  0xa5   :  { %1657 = vmatpush1.bf16.msra.mxu1 %v3008_v35  ;;  %v3100_v35 = vld [vmem:[#allocation6 + $0x2a8] ss:$16 sps:$4 sm:$0xff]  }
  0xa6   :  { %1575 = vmatpush1.bf16.msra.mxu0 %v3005_v33  ;;  %1658 = vmatprep.subr.bf16.mxu1 %v3016_v37  ;;  %v3097_v33 = vld [vmem:[#allocation6 + $0x6a0] ss:$16 sps:$4 sm:$0xff]   ;;  %v3108_v37 = vld [vmem:[#allocation6 + $0x2cc] ss:$16 sps:$4 sm:$0xff]  }
  0xa7   :  { %1576 = vmatprep.subr.bf16.mxu0 %v3013_v36  ;;  %v3105_v36 = vld [vmem:[#allocation6 + $0x6c4] ss:$16 sps:$4 sm:$0xff]  }
  0xa9   :  { %1659 = vmatpush1.bf16.msra.mxu1 %v3014_v39  ;;  %v3106_v39 = vld [vmem:[#allocation6 + $0x2c8] ss:$16 sps:$4 sm:$0xff]  }
  0xaa   :  { %1577 = vmatpush1.bf16.msra.mxu0 %v3011_v38  ;;  %1660 = vmatprep.subr.bf16.mxu1 %v3022_v41  ;;  %v3103_v38 = vld [vmem:[#allocation6 + $0x6c0] ss:$16 sps:$4 sm:$0xff]   ;;  %v3114_v41 = vld [vmem:[#allocation6 + $0x2ec] ss:$16 sps:$4 sm:$0xff]  }
  0xab   :  { %1578 = vmatprep.subr.bf16.mxu0 %v3019_v40  ;;  %v3111_v40 = vld [vmem:[#allocation6 + $0x6e4] ss:$16 sps:$4 sm:$0xff]  }
  0xad   :  { %1661 = vmatpush1.bf16.msra.mxu1 %v3020_v43  ;;  %v3112_v43 = vld [vmem:[#allocation6 + $0x2e8] ss:$16 sps:$4 sm:$0xff]  }
  0xae   :  { %1579 = vmatpush1.bf16.msra.mxu0 %v3017_v42  ;;  %1662 = vmatprep.subr.bf16.mxu1 %v3028_v45  ;;  %v3109_v42 = vld [vmem:[#allocation6 + $0x6e0] ss:$16 sps:$4 sm:$0xff]   ;;  %v3575_v45 = vld [vmem:[#allocation3 + $0x18] ss:$0 sps:$4 sm:$0xff]  }
  0xaf   :  { %1580 = vmatprep.subr.bf16.mxu0 %v3025_v44  ;;  %v3118_v44 = vld [vmem:[#allocation6 + $0x30c] ss:$16 sps:$4 sm:$0xff]  }
  0xb1   :  { %1663 = vmatpush1.bf16.msra.mxu1 %v3026_v47  ;;  %v3121_v47 = vld [vmem:[#allocation6 + $0x32c] ss:$16 sps:$4 sm:$0xff]  }
  0xb2   :  { %1581 = vmatpush1.bf16.msra.mxu0 %v3023_v46  ;;  %1664 = vmatprep.subr.bf16.mxu1 %v3034_v49  ;;  %v3116_v46 = vld [vmem:[#allocation6 + $0x308] ss:$16 sps:$4 sm:$0xff]   ;;  %v3214_v49 = vld [vmem:[#allocation8 + $0x4] ss:$8 sps:$4 sm:$0xff]  }
  0xb3   :  { %1582 = vmatprep.subr.bf16.mxu0 %v3031_v48  ;;  %v3212_v48 = vld [vmem:[#allocation8] ss:$8 sps:$4 sm:$0xff]  }
  0xb5   :  { %1665 = vmatpush1.bf16.msra.mxu1 %v3032_v52  ;;  %v3217_v52 = vld [vmem:[#allocation8 + $0x14] ss:$8 sps:$4 sm:$0xff]  }
  0xb6   :  { %1583 = vmatpush1.bf16.msra.mxu0 %v3029_v50  ;;  %1666 = vmatprep.subr.bf16.mxu1 %v3040_v54  ;;  %v3119_v50 = vld [vmem:[#allocation6 + $0x328] ss:$16 sps:$4 sm:$0xff]  }
  0xb7   :  { %1584 = vmatprep.subr.bf16.mxu0 %v3037_v53  ;;  %v3124_v53 = vld [vmem:[#allocation6 + $0x34c] ss:$16 sps:$4 sm:$0xff]   ;;  %v3215_v54 = vld [vmem:[#allocation8 + $0x10] ss:$8 sps:$4 sm:$0xff]  }
  0xb9   :  { %1667 = vmatpush1.bf16.msra.mxu1 %v3038_v56  ;;  %v3122_v56 = vld [vmem:[#allocation6 + $0x348] ss:$16 sps:$4 sm:$0xff]  }
  0xba   :  { %1585 = vmatpush1.bf16.msra.mxu0 %v3035_v55  ;;  %1668 = vmatprep.subr.bf16.mxu1 %v3046_v58  ;;  %v3220_v55 = vld [vmem:[#allocation8 + $0x24] ss:$8 sps:$4 sm:$0xff]   ;;  %v3218_v58 = vld [vmem:[#allocation8 + $0x20] ss:$8 sps:$4 sm:$0xff]  }
  0xbb   :  { %1586 = vmatprep.subr.bf16.mxu0 %v3043_v57  ;;  %v3127_v57 = vld [vmem:[#allocation6 + $0x36c] ss:$16 sps:$4 sm:$0xff]  }
  0xbd   :  { %1669 = vmatpush1.bf16.msra.mxu1 %v3044_v60  ;;  %v3130_v60 = vld [vmem:[#allocation6 + $0x38c] ss:$16 sps:$4 sm:$0xff]  }
  0xbe   :  { %1587 = vmatpush1.bf16.msra.mxu0 %v3041_v59  ;;  %1670 = vmatprep.subr.bf16.mxu1 %v3052_v62  ;;  %v3125_v59 = vld [vmem:[#allocation6 + $0x368] ss:$16 sps:$4 sm:$0xff]  }
  0xbf   :  { %1588 = vmatprep.subr.bf16.mxu0 %v3049_v61  ;;  %v3223_v61 = vld [vmem:[#allocation8 + $0x34] ss:$8 sps:$4 sm:$0xff]   ;;  %v3221_v62 = vld [vmem:[#allocation8 + $0x30] ss:$8 sps:$4 sm:$0xff]  }
  0xc1   :  { %1671 = vmatpush1.bf16.msra.mxu1 %v3050_v0  ;;  %v3128_v0 = vld [vmem:[#allocation6 + $0x388] ss:$16 sps:$4 sm:$0xff]  }
  0xc2   :  { %1589 = vmatpush1.bf16.msra.mxu0 %v3047_v63  ;;  %1672 = vmatprep.subr.bf16.mxu1 %v3058_v2  ;;  %v3226_v63 = vld [vmem:[#allocation8 + $0x44] ss:$8 sps:$4 sm:$0xff]   ;;  %v3224_v2 = vld [vmem:[#allocation8 + $0x40] ss:$8 sps:$4 sm:$0xff]  }
  0xc3   :  { %1590 = vmatprep.subr.bf16.mxu0 %v3055_v1  ;;  %v3133_v1 = vld [vmem:[#allocation6 + $0x3ac] ss:$16 sps:$4 sm:$0xff]  }
  0xc5   :  { %1673 = vmatpush1.bf16.msra.mxu1 %v3056_v4  ;;  %v3131_v4 = vld [vmem:[#allocation6 + $0x3a8] ss:$16 sps:$4 sm:$0xff]  }
  0xc6   :  { %1591 = vmatpush1.bf16.msra.mxu0 %v3053_v3  ;;  %1674 = vmatprep.subr.bf16.mxu1 %v3064_v8  ;;  %v3229_v3 = vld [vmem:[#allocation8 + $0x54] ss:$8 sps:$4 sm:$0xff]   ;;  %v3227_v8 = vld [vmem:[#allocation8 + $0x50] ss:$8 sps:$4 sm:$0xff]  }
  0xc7   :  { %1592 = vmatprep.subr.bf16.mxu0 %v3061_v5  ;;  %v3136_v5 = vld [vmem:[#allocation6 + $0x3cc] ss:$16 sps:$4 sm:$0xff]  }
  0xc9   :  { %1675 = vmatpush1.bf16.msra.mxu1 %v3062_v10  ;;  %v3134_v10 = vld [vmem:[#allocation6 + $0x3c8] ss:$16 sps:$4 sm:$0xff]  }
  0xca   :  { %1593 = vmatpush1.bf16.msra.mxu0 %v3059_v9  ;;  %1685 = vmatprep.subr.bf16.mxu1 %v3072_v12  ;;  %v3232_v9 = vld [vmem:[#allocation8 + $0x64] ss:$8 sps:$4 sm:$0xff]   ;;  %v3230_v12 = vld [vmem:[#allocation8 + $0x60] ss:$8 sps:$4 sm:$0xff]  }
  0xcb   :  { %1603 = vmatprep.subr.bf16.mxu0 %v3069_v11  ;;  %v3139_v11 = vld [vmem:[#allocation6 + $0x3ec] ss:$16 sps:$4 sm:$0xff]  }
  0xcc   :  { %1677 = vmatmul.mubr.bf16.vlgmr.msra.gmra.mrb[4].mxu1 %v3553_v6  ;;  %v3087_v6 = vld [vmem:[#allocation6 + $0x664] ss:$16 sps:$4 sm:$0xff]  }
  0xcd   :  { %1595 = vmatmul.mubr.bf16.vlgmr.msra.gmra.mrb[0].mxu0 %v3569_v13  ;;  %1686 = vmatpush1.bf16.msra.mxu1 %v3070_v15  ;;  %v3137_v15 = vld [vmem:[#allocation6 + $0x3e8] ss:$16 sps:$4 sm:$0xff]  }
  0xce   :  { %1604 = vmatpush1.bf16.msra.mxu0 %v3067_v14  ;;  %1687 = vmatprep.subr.bf16.mxu1 %v3078_v17  ;;  %v3235_v14 = vld [vmem:[#allocation8 + $0x74] ss:$8 sps:$4 sm:$0xff]   ;;  %v3233_v17 = vld [vmem:[#allocation8 + $0x70] ss:$8 sps:$4 sm:$0xff]  }
  0xcf   :  { %1605 = vmatprep.subr.bf16.mxu0 %v3075_v16  ;;  %1635 = vmatprep.mubr.bf16.mxu0 %v3452_v22  ;;  %v3142_v16 = vld [vmem:[#allocation6 + $0x40c] ss:$16 sps:$4 sm:$0xff]  }
  0xd0   :  { %1717 = vmatprep.mubr.bf16.mxu1 %v3549_v51  ;;  %v3094_v51 = vld [vmem:[#allocation6 + $0x288] ss:$16 sps:$4 sm:$0xff]  }
  0xd1   :  { %1688 = vmatpush1.bf16.msra.mxu1 %v3076_v19  ;;  %v3140_v19 = vld [vmem:[#allocation6 + $0x408] ss:$16 sps:$4 sm:$0xff]  }
  0xd2   :  { %1606 = vmatpush1.bf16.msra.mxu0 %v3073_v18  ;;  %1689 = vmatprep.subr.bf16.mxu1 %v3084_v21  ;;  %v3238_v18 = vld [vmem:[#allocation8 + $0x84] ss:$8 sps:$4 sm:$0xff]   ;;  %v3236_v21 = vld [vmem:[#allocation8 + $0x80] ss:$8 sps:$4 sm:$0xff]  }
  0xd3   :  { %1607 = vmatprep.subr.bf16.mxu0 %v3081_v20  ;;  %v3145_v20 = vld [vmem:[#allocation6 + $0x42c] ss:$16 sps:$4 sm:$0xff]  }
  0xd5   :  { %1690 = vmatpush1.bf16.msra.mxu1 %v3082_v24  ;;  %v3143_v24 = vld [vmem:[#allocation6 + $0x428] ss:$16 sps:$4 sm:$0xff]  }
  0xd6   :  { %1608 = vmatpush1.bf16.msra.mxu0 %v3079_v23  ;;  %1691 = vmatprep.subr.bf16.mxu1 %v3090_v25  ;;  %v3241_v23 = vld [vmem:[#allocation8 + $0x94] ss:$8 sps:$4 sm:$0xff]   ;;  %v3239_v25 = vld [vmem:[#allocation8 + $0x90] ss:$8 sps:$4 sm:$0xff]  }
  0xd7   :  { %1609 = vmatprep.subr.bf16.mxu0 %v3087_v6  ;;  %v3148_v6 = vld [vmem:[#allocation6 + $0x44c] ss:$16 sps:$4 sm:$0xff]  }
  0xd9   :  { %1692 = vmatpush1.bf16.msra.mxu1 %v3088_v27  ;;  %v3146_v27 = vld [vmem:[#allocation6 + $0x448] ss:$16 sps:$4 sm:$0xff]  }
  0xda   :  { %1610 = vmatpush1.bf16.msra.mxu0 %v3085_v26  ;;  %1693 = vmatprep.subr.bf16.mxu1 %v3096_v29  ;;  %v3244_v26 = vld [vmem:[#allocation8 + $0xa4] ss:$8 sps:$4 sm:$0xff]   ;;  %v3242_v29 = vld [vmem:[#allocation8 + $0xa0] ss:$8 sps:$4 sm:$0xff]  }
  0xdb   :  { %1611 = vmatprep.subr.bf16.mxu0 %v3093_v28  ;;  %v3151_v28 = vld [vmem:[#allocation6 + $0x46c] ss:$16 sps:$4 sm:$0xff]  }
  0xdd   :  { %1694 = vmatpush1.bf16.msra.mxu1 %v3094_v51  ;;  %v3154_v51 = vld [vmem:[#allocation6 + $0x48c] ss:$16 sps:$4 sm:$0xff]  }
  0xde   :  { %1612 = vmatpush1.bf16.msra.mxu0 %v3091_v30  ;;  %1695 = vmatprep.subr.bf16.mxu1 %v3102_v32  ;;  %v3149_v30 = vld [vmem:[#allocation6 + $0x468] ss:$16 sps:$4 sm:$0xff]  }
  0xdf   :  { %1613 = vmatprep.subr.bf16.mxu0 %v3099_v31  ;;  %v3250_v31 = vld [vmem:[#allocation8 + $0xc4] ss:$8 sps:$4 sm:$0xff]   ;;  %v3152_v32 = vld [vmem:[#allocation6 + $0x488] ss:$16 sps:$4 sm:$0xff]  }
  0xe1   :  { %1696 = vmatpush1.bf16.msra.mxu1 %v3100_v35  ;;  %v3248_v35 = vld [vmem:[#allocation8 + $0xc0] ss:$8 sps:$4 sm:$0xff]  }
  0xe2   :  { %1614 = vmatpush1.bf16.msra.mxu0 %v3097_v33  ;;  %1697 = vmatprep.subr.bf16.mxu1 %v3108_v37  ;;  %v3157_v33 = vld [vmem:[#allocation6 + $0x4ac] ss:$16 sps:$4 sm:$0xff]   ;;  %v3155_v37 = vld [vmem:[#allocation6 + $0x4a8] ss:$16 sps:$4 sm:$0xff]  }
  0xe3   :  { %1615 = vmatprep.subr.bf16.mxu0 %v3105_v36  ;;  %v3253_v36 = vld [vmem:[#allocation8 + $0xd4] ss:$8 sps:$4 sm:$0xff]  }
  0xe5   :  { %1698 = vmatpush1.bf16.msra.mxu1 %v3106_v39  ;;  %v3251_v39 = vld [vmem:[#allocation8 + $0xd0] ss:$8 sps:$4 sm:$0xff]  }
  0xe6   :  { %1616 = vmatpush1.bf16.msra.mxu0 %v3103_v38  ;;  %1699 = vmatprep.subr.bf16.mxu1 %v3114_v41  ;;  %v3160_v38 = vld [vmem:[#allocation6 + $0x4cc] ss:$16 sps:$4 sm:$0xff]  }
  0xe7   :  { %1617 = vmatprep.subr.bf16.mxu0 %v3111_v40  ;;  %v3158_v40 = vld [vmem:[#allocation6 + $0x4c8] ss:$16 sps:$4 sm:$0xff]   ;;  %v3163_v41 = vld [vmem:[#allocation6 + $0x4ec] ss:$16 sps:$4 sm:$0xff]  }
  0xe9   :  { %1700 = vmatpush1.bf16.msra.mxu1 %v3112_v43  ;;  %v3166_v43 = vld [vmem:[#allocation6 + $0x50c] ss:$16 sps:$4 sm:$0xff]  }
  0xea   :  { %1618 = vmatpush1.bf16.msra.mxu0 %v3109_v42  ;;  %1701 = vmatprep.subr.bf16.mxu1 %v3118_v44  ;;  %v3161_v42 = vld [vmem:[#allocation6 + $0x4e8] ss:$16 sps:$4 sm:$0xff]  }
  0xeb   :  { %2212 = vmatprep.subr.bf16.mxu0 %v3214_v49  ;;  %v3164_v44 = vld [vmem:[#allocation6 + $0x508] ss:$16 sps:$4 sm:$0xff]  }
  0xec   :  { %v3170_v49 = vld [vmem:[#allocation6 + $0x548] ss:$16 sps:$4 sm:$0xff]  }
  0xed   :  { %1636 = vmatmul.mubr.bf16.vlgmr.msra.gmra.mrb[0].mxu0 %v3575_v45  ;;  %1702 = vmatpush1.bf16.msra.mxu1 %v3116_v46  ;;  %v3169_v46 = vld [vmem:[#allocation6 + $0x52c] ss:$16 sps:$4 sm:$0xff]  }
  0xee   :  { %1703 = vmatprep.subr.bf16.mxu1 %v3121_v47  ;;  %2213 = vmatpush1.bf16.msra.mxu0 %v3212_v48  ;;  %v3167_v47 = vld [vmem:[#allocation6 + $0x528] ss:$16 sps:$4 sm:$0xff]   ;;  %v3172_v48 = vld [vmem:[#allocation6 + $0x54c] ss:$16 sps:$4 sm:$0xff]  }
  0xef   :  { %2214 = vmatprep.subr.bf16.mxu0 %v3217_v52  ;;  %v3173_v52 = vld [vmem:[#allocation6 + $0x568] ss:$16 sps:$4 sm:$0xff]  }
  0xf1   :  { %1704 = vmatpush1.bf16.msra.mxu1 %v3119_v50  ;;  %v3175_v50 = vld [vmem:[#allocation6 + $0x56c] ss:$16 sps:$4 sm:$0xff]  }
  0xf2   :  { %1705 = vmatprep.subr.bf16.mxu1 %v3124_v53  ;;  %2215 = vmatpush1.bf16.msra.mxu0 %v3215_v54  ;;  %v3178_v53 = vld [vmem:[#allocation6 + $0x58c] ss:$16 sps:$4 sm:$0xff]   ;;  %v3176_v54 = vld [vmem:[#allocation6 + $0x588] ss:$16 sps:$4 sm:$0xff]  }
  0xf3   :  { %2216 = vmatprep.subr.bf16.mxu0 %v3220_v55  ;;  %v3181_v55 = vld [vmem:[#allocation6 + $0x5ac] ss:$16 sps:$4 sm:$0xff]  }
  0xf5   :  { %1706 = vmatpush1.bf16.msra.mxu1 %v3122_v56  ;;  %v3179_v56 = vld [vmem:[#allocation6 + $0x5a8] ss:$16 sps:$4 sm:$0xff]  }
  0xf6   :  { %1707 = vmatprep.subr.bf16.mxu1 %v3127_v57  ;;  %2217 = vmatpush1.bf16.msra.mxu0 %v3218_v58  ;;  %v3184_v57 = vld [vmem:[#allocation6 + $0x5cc] ss:$16 sps:$4 sm:$0xff]  }
  0xf7   :  { %2218 = vmatprep.subr.bf16.mxu0 %v3223_v61  ;;  %v3256_v58 = vld [vmem:[#allocation8 + $0xe4] ss:$8 sps:$4 sm:$0xff]  }
  0xf8   :  { %v3187_v61 = vld [vmem:[#allocation6 + $0x5ec] ss:$16 sps:$4 sm:$0xff]  }
  0xf9   :  { %1708 = vmatpush1.bf16.msra.mxu1 %v3125_v59  ;;  %v3254_v59 = vld [vmem:[#allocation8 + $0xe0] ss:$8 sps:$4 sm:$0xff]  }
  0xfa   :  { %1709 = vmatprep.subr.bf16.mxu1 %v3130_v60  ;;  %2219 = vmatpush1.bf16.msra.mxu0 %v3221_v62  ;;  %v3182_v60 = vld [vmem:[#allocation6 + $0x5c8] ss:$16 sps:$4 sm:$0xff]   ;;  %v3259_v62 = vld [vmem:[#allocation8 + $0xf4] ss:$8 sps:$4 sm:$0xff]  }
  0xfb   :  { %2220 = vmatprep.subr.bf16.mxu0 %v3226_v63  ;;  %v3257_v63 = vld [vmem:[#allocation8 + $0xf0] ss:$8 sps:$4 sm:$0xff]  }
  0xfd   :  { %1710 = vmatpush1.bf16.msra.mxu1 %v3128_v0  ;;  %v3185_v0 = vld [vmem:[#allocation6 + $0x5e8] ss:$16 sps:$4 sm:$0xff]  }
  0xfe   :  { %1711 = vmatprep.subr.bf16.mxu1 %v3133_v1  ;;  %2221 = vmatpush1.bf16.msra.mxu0 %v3224_v2  ;;  %v3190_v1 = vld [vmem:[#allocation6 + $0x60c] ss:$16 sps:$4 sm:$0xff]  }
  0xff   :  { %2222 = vmatprep.subr.bf16.mxu0 %v3229_v3  ;;  %v3262_v2 = vld [vmem:[#allocation8 + $0x104] ss:$8 sps:$4 sm:$0xff]   ;;  %v3188_v3 = vld [vmem:[#allocation6 + $0x608] ss:$16 sps:$4 sm:$0xff]  }
 0x101   :  { %1712 = vmatpush1.bf16.msra.mxu1 %v3131_v4  ;;  %v3193_v4 = vld [vmem:[#allocation6 + $0x62c] ss:$16 sps:$4 sm:$0xff]  }
 0x102   :  { %1713 = vmatprep.subr.bf16.mxu1 %v3136_v5  ;;  %2223 = vmatpush1.bf16.msra.mxu0 %v3227_v8  ;;  %v3191_v5 = vld [vmem:[#allocation6 + $0x628] ss:$16 sps:$4 sm:$0xff]   ;;  %v3196_v8 = vld [vmem:[#allocation6 + $0x64c] ss:$16 sps:$4 sm:$0xff]  }
 0x103   :  { %2224 = vmatprep.subr.bf16.mxu0 %v3232_v9  ;;  %v3194_v9 = vld [vmem:[#allocation6 + $0x648] ss:$16 sps:$4 sm:$0xff]  }
 0x105   :  { %1714 = vmatpush1.bf16.msra.mxu1 %v3134_v10  ;;  %v3199_v10 = vld [vmem:[#allocation6 + $0x66c] ss:$16 sps:$4 sm:$0xff]  }
 0x106   :  { %1715 = vmatprep.subr.bf16.mxu1 %v3139_v11  ;;  %2225 = vmatpush1.bf16.msra.mxu0 %v3230_v12  ;;  %v3197_v11 = vld [vmem:[#allocation6 + $0x668] ss:$16 sps:$4 sm:$0xff]   ;;  %v3202_v12 = vld [vmem:[#allocation6 + $0x68c] ss:$16 sps:$4 sm:$0xff]  }
 0x107   :  { %2226 = vmatprep.subr.bf16.mxu0 %v3235_v14  ;;  %v3200_v14 = vld [vmem:[#allocation6 + $0x688] ss:$16 sps:$4 sm:$0xff]  }
 0x109   :  { %1716 = vmatpush1.bf16.msra.mxu1 %v3137_v15  ;;  %v3205_v15 = vld [vmem:[#allocation6 + $0x6ac] ss:$16 sps:$4 sm:$0xff]  }
 0x10a   :  { %1726 = vmatprep.subr.bf16.mxu1 %v3142_v16  ;;  %2227 = vmatpush1.bf16.msra.mxu0 %v3233_v17  ;;  %v3208_v16 = vld [vmem:[#allocation6 + $0x6cc] ss:$16 sps:$4 sm:$0xff]  }
 0x10b   :  { %2228 = vmatprep.subr.bf16.mxu0 %v3238_v18 }
 0x10c   :  { %1718 = vmatmul.mubr.bf16.vlgmr.msra.gmra.mrb[4].mxu1 %v3555_v7  ;;  %v3247_v7 = vld [vmem:[#allocation8 + $0xb4] ss:$8 sps:$4 sm:$0xff]  }
 0x10d   :  { %1727 = vmatpush1.bf16.msra.mxu1 %v3140_v19  ;;  %1758 = vmatprep.mubr.bf16.mxu1 %v3564_v34  ;;  %v3245_v34 = vld [vmem:[#allocation8 + $0xb0] ss:$8 sps:$4 sm:$0xff]  }
 0x10e   :  { %1728 = vmatprep.subr.bf16.mxu1 %v3145_v20  ;;  %2229 = vmatpush1.bf16.msra.mxu0 %v3236_v21  ;;  %v3206_v19 = vld [vmem:[#allocation6 + $0x6c8] ss:$16 sps:$4 sm:$0xff]   ;;  %v3211_v21 = vld [vmem:[#allocation6 + $0x6ec] ss:$16 sps:$4 sm:$0xff]  }
 0x10f   :  { %2230 = vmatprep.subr.bf16.mxu0 %v3241_v23  ;;  %v3209_v23 = vld [vmem:[#allocation6 + $0x6e8] ss:$16 sps:$4 sm:$0xff]  }
 0x111   :  { %1729 = vmatpush1.bf16.msra.mxu1 %v3143_v24  ;;  %v315_v24 = vlaneseq }
 0x112   :  { %1730 = vmatprep.subr.bf16.mxu1 %v3148_v6  ;;  %2231 = vmatpush1.bf16.msra.mxu0 %v3239_v25 }
 0x113   :  { %2232 = vmatprep.subr.bf16.mxu0 %v3244_v26  ;;  %v3583_v6 = vshrl.u32 %v315_v24, 7  ;;  %v3589_v26 = vld [vmem:[%s3627_s3] sm:$0xf] }
 0x115   :  { %1731 = vmatpush1.bf16.msra.mxu1 %v3146_v27  ;;  %v317_v25 = vsub.s32 0, %v3583_v6  ;;  %v321_v27 = vsub.s32 1, %v3583_v6 }
 0x116   :  { %1732 = vmatprep.subr.bf16.mxu1 %v3151_v28  ;;  %2233 = vmatpush1.bf16.msra.mxu0 %v3242_v29 }
 0x117   :  { %2234 = vmatprep.subr.bf16.mxu0 %v3247_v7  ;;  %v318_v28 = vrot.slane %v3589_v26, %v317_v25 }
 0x119   :  { %1733 = vmatpush1.bf16.msra.mxu1 %v3149_v30 }
 0x11a   :  { %1734 = vmatprep.subr.bf16.mxu1 %v3154_v51  ;;  %2235 = vmatpush1.bf16.msra.mxu0 %v3245_v34 }
 0x11b   :  { %2236 = vmatprep.subr.bf16.mxu0 %v3250_v31 }
 0x11d   :  { %1735 = vmatpush1.bf16.msra.mxu1 %v3152_v32 }
 0x11e   :  { %1736 = vmatprep.subr.bf16.mxu1 %v3157_v33  ;;  %2237 = vmatpush1.bf16.msra.mxu0 %v3248_v35 }
 0x11f   :  { %2238 = vmatprep.subr.bf16.mxu0 %v3253_v36 }
 0x121   :  { %1737 = vmatpush1.bf16.msra.mxu1 %v3155_v37 }
 0x122   :  { %1738 = vmatprep.subr.bf16.mxu1 %v3160_v38  ;;  %2239 = vmatpush1.bf16.msra.mxu0 %v3251_v39  ;;  %v3260_v38 = vld [vmem:[#allocation8 + $0x100] ss:$8 sps:$4 sm:$0xff]  }
 0x123   :  { %2240 = vmatprep.subr.bf16.mxu0 %v3256_v58  ;;  %v3272_v58 = vld [vmem:[#allocation8 + $0x140] ss:$8 sps:$4 sm:$0xff]  }
 0x125   :  { %1739 = vmatpush1.bf16.msra.mxu1 %v3158_v40  ;;  %v3265_v40 = vld [vmem:[#allocation8 + $0x114] ss:$8 sps:$4 sm:$0xff]  }
 0x126   :  { %1740 = vmatprep.subr.bf16.mxu1 %v3163_v41  ;;  %2241 = vmatpush1.bf16.msra.mxu0 %v3254_v59  ;;  %v3308_v41 = vld [vmem:[#allocation9 + $0x40] sm:$0xff]   ;;  %v3277_v59 = vld [vmem:[#allocation8 + $0x154] ss:$8 sps:$4 sm:$0xff]  }
 0x127   :  { %2242 = vmatprep.subr.bf16.mxu0 %v3259_v62  ;;  %v3275_v62 = vld [vmem:[#allocation8 + $0x150] ss:$8 sps:$4 sm:$0xff]  }
 0x129   :  { %1741 = vmatpush1.bf16.msra.mxu1 %v3161_v42  ;;  %v3309_v42 = vld [vmem:[#allocation9] sm:$0xff]  }
 0x12a   :  { %1742 = vmatprep.subr.bf16.mxu1 %v3166_v43  ;;  %2243 = vmatpush1.bf16.msra.mxu0 %v3257_v63  ;;  %v3310_v43 = vld [vmem:[#allocation9 + $0x48] sm:$0xff]  }
 0x12b   :  { %2253 = vmatprep.subr.bf16.mxu0 %v3262_v2  ;;  %v3280_v63 = vld [vmem:[#allocation8 + $0x164] ss:$8 sps:$4 sm:$0xff]   ;;  %v3283_v2 = vld [vmem:[#allocation8 + $0x174] ss:$8 sps:$4 sm:$0xff]  }
 0x12d   :  { %1743 = vmatpush1.bf16.msra.mxu1 %v3164_v44  ;;  %v3263_v44 = vld [vmem:[#allocation8 + $0x110] ss:$8 sps:$4 sm:$0xff]  }
 0x12e   :  { %1744 = vmatprep.subr.bf16.mxu1 %v3169_v46  ;;  %v3268_v46 = vld [vmem:[#allocation8 + $0x124] ss:$8 sps:$4 sm:$0xff]  }
 0x131   :  { %1745 = vmatpush1.bf16.msra.mxu1 %v3167_v47  ;;  %v3311_v47 = vld [vmem:[#allocation9 + $0x8] sm:$0xff]  }
 0x132   :  { %1746 = vmatprep.subr.bf16.mxu1 %v3172_v48  ;;  %v3312_v48 = vld [vmem:[#allocation9 + $0x50] sm:$0xff]  }
 0x135   :  { %1747 = vmatpush1.bf16.msra.mxu1 %v3170_v49  ;;  %v3266_v49 = vld [vmem:[#allocation8 + $0x120] ss:$8 sps:$4 sm:$0xff]  }
 0x136   :  { %1748 = vmatprep.subr.bf16.mxu1 %v3175_v50  ;;  %v3271_v50 = vld [vmem:[#allocation8 + $0x134] ss:$8 sps:$4 sm:$0xff]  }
 0x139   :  { %1749 = vmatpush1.bf16.msra.mxu1 %v3173_v52  ;;  %v3313_v52 = vld [vmem:[#allocation9 + $0x10] sm:$0xff]  }
 0x13a   :  { %1750 = vmatprep.subr.bf16.mxu1 %v3178_v53  ;;  %v3314_v53 = vld [vmem:[#allocation9 + $0x58] sm:$0xff]  }
 0x13d   :  { %1751 = vmatpush1.bf16.msra.mxu1 %v3176_v54  ;;  %v3269_v54 = vld [vmem:[#allocation8 + $0x130] ss:$8 sps:$4 sm:$0xff]  }
 0x13e   :  { %1752 = vmatprep.subr.bf16.mxu1 %v3181_v55  ;;  %v3274_v55 = vld [vmem:[#allocation8 + $0x144] ss:$8 sps:$4 sm:$0xff]  }
 0x141   :  { %1753 = vmatpush1.bf16.msra.mxu1 %v3179_v56  ;;  %v3315_v56 = vld [vmem:[#allocation9 + $0x18] sm:$0xff]  }
 0x142   :  { %1754 = vmatprep.subr.bf16.mxu1 %v3184_v57  ;;  %v3316_v57 = vld [vmem:[#allocation9 + $0x60] sm:$0xff]  }
 0x145   :  { %1755 = vmatpush1.bf16.msra.mxu1 %v3182_v60  ;;  %v3317_v60 = vld [vmem:[#allocation9 + $0x20] sm:$0xff]  }
 0x146   :  { %1756 = vmatprep.subr.bf16.mxu1 %v3187_v61  ;;  %v3318_v61 = vld [vmem:[#allocation9 + $0x68] sm:$0xff]  }
 0x149   :  { %1757 = vmatpush1.bf16.msra.mxu1 %v3185_v0  ;;  %v3319_v0 = vld [vmem:[#allocation9 + $0x28] sm:$0xff]  }
 0x14a   :  { %1767 = vmatprep.subr.bf16.mxu1 %v3190_v1  ;;  %v3278_v1 = vld [vmem:[#allocation8 + $0x160] ss:$8 sps:$4 sm:$0xff]  }
 0x14c   :  { %1759 = vmatmul.mubr.bf16.vlgmr.msra.gmra.mrb[4].mxu1 %v3569_v13  ;;  %v3203_v13 = vld [vmem:[#allocation6 + $0x6a8] ss:$16 sps:$4 sm:$0xff]  }
 0x14d   :  { %1768 = vmatpush1.bf16.msra.mxu1 %v3188_v3  ;;  %1799 = vmatprep.mubr.bf16.mxu1 %v3452_v22  ;;  %v3281_v3 = vld [vmem:[#allocation8 + $0x170] ss:$8 sps:$4 sm:$0xff]  }
 0x14e   :  { %1769 = vmatprep.subr.bf16.mxu1 %v3193_v4  ;;  %v3286_v4 = vld [vmem:[#allocation8 + $0x184] ss:$8 sps:$4 sm:$0xff]  }
 0x151   :  { %1770 = vmatpush1.bf16.msra.mxu1 %v3191_v5  ;;  %v3284_v5 = vld [vmem:[#allocation8 + $0x180] ss:$8 sps:$4 sm:$0xff]  }
 0x152   :  { %1771 = vmatprep.subr.bf16.mxu1 %v3196_v8  ;;  %v3289_v8 = vld [vmem:[#allocation8 + $0x194] ss:$8 sps:$4 sm:$0xff]  }
 0x155   :  { %1772 = vmatpush1.bf16.msra.mxu1 %v3194_v9  ;;  %v3287_v9 = vld [vmem:[#allocation8 + $0x190] ss:$8 sps:$4 sm:$0xff]  }
 0x156   :  { %1773 = vmatprep.subr.bf16.mxu1 %v3199_v10  ;;  %v3292_v10 = vld [vmem:[#allocation8 + $0x1a4] ss:$8 sps:$4 sm:$0xff]  }
 0x159   :  { %1774 = vmatpush1.bf16.msra.mxu1 %v3197_v11  ;;  %v3290_v11 = vld [vmem:[#allocation8 + $0x1a0] ss:$8 sps:$4 sm:$0xff]  }
 0x15a   :  { %1775 = vmatprep.subr.bf16.mxu1 %v3202_v12  ;;  %v3295_v12 = vld [vmem:[#allocation8 + $0x1b4] ss:$8 sps:$4 sm:$0xff]  }
 0x15d   :  { %1776 = vmatpush1.bf16.msra.mxu1 %v3200_v14  ;;  %v3293_v14 = vld [vmem:[#allocation8 + $0x1b0] ss:$8 sps:$4 sm:$0xff]  }
 0x15e   :  { %1777 = vmatprep.subr.bf16.mxu1 %v3205_v15  ;;  %v3298_v15 = vld [vmem:[#allocation8 + $0x1c4] ss:$8 sps:$4 sm:$0xff]  }
 0x15f   :  { %v1514_v17 = vpop.f32.mrb[0].mxu1 }
 0x160   :  { %v1516_v22 = vpop.f32.mrb[1].mxu1  ;;  %v1515_v29 = vadd.f32 %v1514_v17, %v318_v28  ;;  %v3299_v17 = vld [vmem:[#allocation8 + $0x1d0] ss:$8 sps:$4 sm:$0xff]  }
 0x161   :  { %v1518_v18 = vpop.f32.mrb[2].mxu1  ;;  %1778 = vmatpush1.bf16.msra.mxu1 %v3203_v13  ;;  %v3296_v13 = vld [vmem:[#allocation8 + $0x1c0] ss:$8 sps:$4 sm:$0xff]  }
 0x162   :  { %v1519_v20 = vpop.f32.mrb[3].mxu1  ;;  %1779 = vmatprep.subr.bf16.mxu1 %v3208_v16  ;;  %v3301_v16 = vld [vmem:[#allocation8 + $0x1d4] ss:$8 sps:$4 sm:$0xff]   ;;  %v3302_v18 = vld [vmem:[#allocation8 + $0x1e0] ss:$8 sps:$4 sm:$0xff]  }
 0x163   :  { %v3305_v20 = vld [vmem:[#allocation8 + $0x1f0] ss:$8 sps:$4 sm:$0xff]  }
 0x165   :  { %1780 = vmatpush1.bf16.msra.mxu1 %v3206_v19  ;;  %v3307_v19 = vld [vmem:[#allocation8 + $0x1f4] ss:$8 sps:$4 sm:$0xff]  }
 0x166   :  { %1781 = vmatprep.subr.bf16.mxu1 %v3211_v21  ;;  %v325_v21 = vsub.s32 2, %v3583_v6 }
 0x168   :  { %v326_v24 = vrot.slane %v3589_v26, %v325_v21 }
 0x169   :  { %1782 = vmatpush1.bf16.msra.mxu1 %v3209_v23  ;;  %v329_v23 = vsub.s32 3, %v3583_v6 }
 0x16a   :  { %2803 = vmatprep.subr.bf16.mxu1 %v3308_v41 }
 0x16b   :  { %v330_v28 = vrot.slane %v3589_v26, %v329_v23 }
 0x16c   :  { %1800 = vmatmul.mubr.bf16.vlgmr.msra.gmra.mrb[4].mxu1 %v3575_v45  ;;  %v322_v45 = vrot.slane %v3589_v26, %v321_v27  ;;  %v1880_v26 = vld [vmem:[%s3629_s5] sm:$0x3] }
 0x16d   :  { %2804 = vmatpush3.bf16.msra.mxu1 %v3309_v42  ;;  %v1889_v41 = vrot.slane %v1880_v26, %v321_v27 }
 0x16e   :  { %v1517_v7 = vadd.f32 %v1516_v22, %v322_v45  ;;  %2805 = vmatprep.subr.bf16.mxu1 %v3310_v43  ;;  %v3304_v22 = vld [vmem:[#allocation8 + $0x1e4] ss:$8 sps:$4 sm:$0xff]  }
 0x171   :  { %2806 = vmatpush3.bf16.msra.mxu1 %v3311_v47 }
 0x172   :  { %2807 = vmatprep.subr.bf16.mxu1 %v3312_v48 }
 0x175   :  { %2808 = vmatpush3.bf16.msra.mxu1 %v3313_v52 }
 0x176   :  { %2809 = vmatprep.subr.bf16.mxu1 %v3314_v53 }
 0x179   :  { %2810 = vmatpush3.bf16.msra.mxu1 %v3315_v56 }
 0x17a   :  { %2811 = vmatprep.subr.bf16.mxu1 %v3316_v57 }
 0x17d   :  { %2812 = vmatpush3.bf16.msra.mxu1 %v3317_v60 }
 0x17e   :  { %2813 = vmatprep.subr.bf16.mxu1 %v3318_v61 }
 0x181   :  { %2814 = vmatpush3.bf16.msra.mxu1 %v3319_v0 }
 0x1c0   :  { %v1637_v30 = vpop.f32.mrb[0].mxu0 }
 0x1c1   :  { %v2826_v51 = vadd.f32 %v1637_v30, %v1515_v29  ;;  %v1639_v34 = vpop.f32.mrb[1].mxu0 }
 0x1c2   :  { %v2828_v31 = vadd.f32 %v1639_v34, %v1517_v7  ;;  %v1641_v32 = vpop.f32.mrb[2].mxu0 }
 0x1c3   :  { %v1808_v33 = vmax.f32 %v2826_v51, 0.0  ;;  %v1642_v35 = vpop.f32.mrb[3].mxu0 }
 0x1c4   :  { %v1809_v36 = vmax.f32 %v2828_v31, 0.0 }
 0x1c5   :  { %v1812_v39 = vpack.c.bf16 %v1808_v33, %v1808_v33 }
 0x1c6   :  { %v1813_v37 = vpack.c.bf16 %v1809_v36, %v1809_v36  ;;  %v3320_v36 = vld [vmem:[#allocation9 + $0x70] sm:$0xff]  }
 0x1c7   :  { %2815 = vmatprep.subr.bf16.mxu1 %v3320_v36 }
 0x1c8   :  { %2244 = vmatprep.mubr.bf16.mxu0 %v1813_v37  ;;  %v3321_v37 = vld [vmem:[#allocation9 + $0x30] sm:$0xff]  }
 0x1c9   :  { %2245 = vmatmul.mubr.bf16.vlgmr.msra.gmra.mrb[4].mxu0 %v1812_v39  ;;  %2816 = vmatpush3.bf16.msra.mxu1 %v3321_v37  ;;  %v3323_v39 = vld [vmem:[#allocation9 + $0x38] sm:$0xff]  }
 0x1ca   :  { %2254 = vmatpush1.bf16.msra.mxu0 %v3260_v38  ;;  %v3322_v38 = vld [vmem:[#allocation9 + $0x78] sm:$0xff]  }
 0x1cb   :  { %2255 = vmatprep.subr.bf16.mxu0 %v3265_v40  ;;  %2817 = vmatprep.subr.bf16.mxu1 %v3322_v38  ;;  %v1885_v40 = vrot.slane %v1880_v26, %v317_v25  ;;  %v2786_v25 = vld [vmem:[%s3631_s7] ss:$0 sm:$0xff] }
 0x1cd   :  { %2818 = vmatpush3.bf16.msra.mxu1 %v3323_v39 }
 0x1ce   :  { %2256 = vmatpush1.bf16.msra.mxu0 %v3263_v44 }
 0x1cf   :  { %2257 = vmatprep.subr.bf16.mxu0 %v3268_v46 }
 0x1d2   :  { %2258 = vmatpush1.bf16.msra.mxu0 %v3266_v49 }
 0x1d3   :  { %2259 = vmatprep.subr.bf16.mxu0 %v3271_v50 }
 0x1d6   :  { %2260 = vmatpush1.bf16.msra.mxu0 %v3269_v54 }
 0x1d7   :  { %2261 = vmatprep.subr.bf16.mxu0 %v3274_v55 }
 0x1da   :  { %2262 = vmatpush1.bf16.msra.mxu0 %v3272_v58 }
 0x1db   :  { %2263 = vmatprep.subr.bf16.mxu0 %v3277_v59 }
 0x1de   :  { %2264 = vmatpush1.bf16.msra.mxu0 %v3275_v62 }
 0x1df   :  { %2265 = vmatprep.subr.bf16.mxu0 %v3280_v63 }
 0x1e2   :  { %2266 = vmatpush1.bf16.msra.mxu0 %v3278_v1 }
 0x1e3   :  { %2267 = vmatprep.subr.bf16.mxu0 %v3283_v2 }
 0x1e6   :  { %2268 = vmatpush1.bf16.msra.mxu0 %v3281_v3 }
 0x1e7   :  { %2269 = vmatprep.subr.bf16.mxu0 %v3286_v4 }
 0x1ea   :  { %2270 = vmatpush1.bf16.msra.mxu0 %v3284_v5 }
 0x1eb   :  { %2271 = vmatprep.subr.bf16.mxu0 %v3289_v8 }
 0x1ee   :  { %2272 = vmatpush1.bf16.msra.mxu0 %v3287_v9 }
 0x1ef   :  { %2273 = vmatprep.subr.bf16.mxu0 %v3292_v10 }
 0x1f2   :  { %2274 = vmatpush1.bf16.msra.mxu0 %v3290_v11 }
 0x1f3   :  { %2275 = vmatprep.subr.bf16.mxu0 %v3295_v12 }
 0x1f6   :  { %2276 = vmatpush1.bf16.msra.mxu0 %v3293_v14 }
 0x1f7   :  { %2277 = vmatprep.subr.bf16.mxu0 %v3298_v15 }
 0x1fa   :  { %2278 = vmatpush1.bf16.msra.mxu0 %v3296_v13 }
 0x1fb   :  { %2279 = vmatprep.subr.bf16.mxu0 %v3301_v16 }
 0x1fe   :  { %2280 = vmatpush1.bf16.msra.mxu0 %v3299_v17 }
 0x1ff   :  { %2281 = vmatprep.subr.bf16.mxu0 %v3304_v22 }
 0x202   :  { %2282 = vmatpush1.bf16.msra.mxu0 %v3302_v18 }
 0x203   :  { %2283 = vmatprep.subr.bf16.mxu0 %v3307_v19 }
 0x206   :  { %2284 = vmatpush1.bf16.msra.mxu0 %v3305_v20 }
 0x23f   :  { %v1801_v45 = vpop.f32.mrb[4].mxu1 }
 0x240   :  { %v2829_v29 = vadd.f32 %v1801_v45, %v326_v24  ;;  %v1803_v7 = vpop.f32.mrb[5].mxu1 }
 0x241   :  { %v2830_v30 = vadd.f32 %v1803_v7, %v330_v28  ;;  %v1805_v51 = vpop.f32.mrb[6].mxu1 }
 0x242   :  { %v1810_v34 = vmax.f32 %v2829_v29, 0.0  ;;  %v1806_v31 = vpop.f32.mrb[7].mxu1 }
 0x243   :  { %v1811_v32 = vmax.f32 %v2830_v30, 0.0 }
 0x244   :  { %v1814_v35 = vpack.c.bf16 %v1810_v34, %v1810_v34 }
 0x245   :  { %v1815_v33 = vpack.c.bf16 %v1811_v32, %v1811_v32 }
 0x247   :  { %2285 = vmatprep.mubr.bf16.mxu0 %v1815_v33 }
 0x248   :  { %2286 = vmatmul.mubr.bf16.vlgmr.msra.gmra.mrb[4].mxu0 %v1814_v35 }
 0x31b   :  { %v2287_v42 = vpop.f32.mrb[4].mxu0 }
 0x31c   :  { %v2831_v43 = vadd.f32 %v2287_v42, %v1885_v40  ;;  %v2289_v44 = vpop.f32.mrb[5].mxu0 }
 0x31d   :  { %v2832_v46 = vadd.f32 %v2289_v44, %v1889_v41  ;;  %v2291_v47 = vpop.f32.mrb[6].mxu0 }
 0x31e   :  { %v2294_v48 = vmax.f32 %v2831_v43, 0.0  ;;  %v2292_v49 = vpop.f32.mrb[7].mxu0 }
 0x31f   :  { %v2295_v50 = vmax.f32 %v2832_v46, 0.0 }
 0x320   :  { %v2296_v53 = vpack.c.bf16 %v2294_v48, %v2294_v48 }
 0x321   :  { %v2297_v52 = vpack.c.bf16 %v2295_v50, %v2295_v50 }
 0x323   :  { %2465 = vmatprep.mubr.bf16.mxu1 %v2297_v52 }
 0x324   :  { %2466 = vmatmul.mubr.bf16.vlgmr.msra.gmra.mrb[8].mxu1 %v2296_v53 }
 0x3f7   :  { %v2819_v54 = vpop.f32.mrb[8].mxu1 }
 0x3f8   :  { %v2820_v55 = vpop.f32.mrb[9].mxu1 }
 0x3f9   :  { %v2821_v6 = vadd.f32 %v2820_v55, %v2819_v54  ;;  %v2822_v27 = vpop.f32.mrb[10].mxu1 }
 0x3fa   :  { %v2823_v56 = vpop.f32.mrb[11].mxu1 }
 0x3fb   :  { %v2468_v57 = vadd.f32 %v2821_v6, %v2786_v25 }
 0x3fd   :  { %2473 = vst [vmem:[#allocation11] sm:$0xff] %v2468_v57 }
 0x3fe   :  { %3423 = shalt.err (!%p3420_p8)
}
 0x3ff   :  { %s3424_s7 = scalar_lea.hbm %s3632_s8, 128 }
 0x400   :  { %p3425_p9 = scmp.ne.s32.totalorder %s3632_s8, %s3424_s7  ;;  %p3428_p10 = scmp.lt.u32.totalorder %s3424_s7, %s3632_s8 }
 0x402   :  { %p3430_p11 = pnand %p3428_p10, %p3425_p9 }
 0x404   :  { %3433 = shalt.err (!%p3430_p11)
}
 0x405   :  { %2483 = dma.vmem_to_hbm [thread:$0]  %s2481_s12, 128, %s3632_s8, [#allocation5]  }
 0x406   :  { %3440 = dma.done.wait [#allocation5], 128  }
 0x407   :  { %3441 = vsyncadd [#allocation5], 4294967168 }
 0x408   :  { %2487 = vsyncpa [#allocation4], 1 }
 0x409   :  { %2488 = vsyncpa [#allocation7], 1 }
 0x40a   :  { %2489 = vsyncpa [#allocation10], 1 }
 0x40b   :  { %2490 = vsyncpa [#allocation5], 1 }

</bundles_post_ra>
